<compile_context>
chip_gen: v7x
topology: tpu7x:2x2x1
jax: 0.10.0
libtpu: 0.0.40
codegen_flags: <defaults>
</compile_context>

<pallas_src>
import functools
import math

import jax
import jax.numpy as jnp
from jax.experimental import pallas as pl
from jax.experimental.pallas import tpu as pltpu

LANE = 128  # TPU lane width; channel dims padded to multiples of this.


def _round_up(x, m):
    return (x + m - 1) // m * m


def _pad_to(a, shape):
    return jnp.pad(a, [(0, t - s) for s, t in zip(a.shape, shape)])


# --------------------- kernel 1: fused 1x1 conv (+BN shift, +ReLU) ---------------------
def _mm_shift_kernel(x_ref, w_ref, shift_ref, o_ref, *, relu):
    # (TM, K) @ (K, TN) on the MXU (bf16 in, f32 accumulate) + folded-BN shift.
    y = jnp.dot(x_ref[...], w_ref[...], preferred_element_type=jnp.float32)
    y = y + shift_ref[...]
    if relu:
        y = jnp.maximum(y, 0.0)
    o_ref[...] = y.astype(o_ref.dtype)


def _pick_tm(m):
    # Largest row tile that divides M -> no padded copy for typical shapes.
    for tm in (512, 256, 128):
        if m % tm == 0:
            return tm, m
    return 128, _round_up(m, 128)


def matmul_shift(x, w, shift, *, relu, out_dtype):
    """relu_opt(x @ w + shift).  x:(M,K) bf16, w:(K,Np) bf16, shift:(Np,) f32."""
    m, k = x.shape
    np_ = w.shape[1]                      # already a multiple of LANE
    tm, mp = _pick_tm(m)
    tn = 256 if np_ % 256 == 0 else 128   # match 256-wide MXU on v6e/v7x
    if mp != m:
        # Cold fallback: padded rows only flow through the elementwise epilogue
        # and are sliced off below; they never mix into valid rows.
        x = jnp.pad(x, ((0, mp - m), (0, 0)))
    out = pl.pallas_call(
        functools.partial(_mm_shift_kernel, relu=relu),
        out_shape=jax.ShapeDtypeStruct((mp, np_), out_dtype),
        grid=(mp // tm, np_ // tn),
        in_specs=[
            pl.BlockSpec((tm, k), lambda i, j: (i, 0)),
            pl.BlockSpec((k, tn), lambda i, j: (0, j)),
            pl.BlockSpec((1, tn), lambda i, j: (0, j)),
        ],
        out_specs=pl.BlockSpec((tm, tn), lambda i, j: (i, j)),
        compiler_params=pltpu.CompilerParams(
            dimension_semantics=("parallel", "parallel")),
    )(x, w, shift.reshape(1, np_))
    return out[:m] if mp != m else out


# ------------- kernel 2: conv2(3x3) + conv3(1x1) + residual, fully fused -------------
def _fused_conv_kernel(comps_ref, w2_ref, s2_ref, w3_ref, s3_ref, res_ref, *rest,
                       stride, ho, wo, has_down):
    if has_down:
        wd_ref, sd_ref, o_ref = rest
    else:
        (o_ref,) = rest
    s = stride
    cp = w2_ref.shape[1]

    # conv2: nine accumulating matmuls over shifted taps of the padded,
    # polyphase-split conv1 output resident in VMEM (no im2col buffer).
    acc = jnp.zeros((ho * wo, cp), jnp.float32)
    for kh in range(3):
        for kw in range(3):
            ci = (kh % s) * s + (kw % s)
            tap = comps_ref[ci, pl.ds(kh // s, ho), pl.ds(kw // s, wo), :]
            acc = acc + jnp.dot(tap.reshape(ho * wo, cp), w2_ref[kh * 3 + kw],
                                preferred_element_type=jnp.float32)
    h = jnp.maximum(acc + s2_ref[...], 0.0).astype(w3_ref.dtype)   # -> bf16

    # conv3 (1x1) + shift + residual + ReLU.
    y = jnp.dot(h, w3_ref[...], preferred_element_type=jnp.float32) + s3_ref[...]
    r = res_ref[0]
    if has_down:
        y = y + jnp.dot(r, wd_ref[...], preferred_element_type=jnp.float32)
        y = y + sd_ref[...]
    else:
        y = y + r.astype(jnp.float32)
    o_ref[0] = jnp.maximum(y, 0.0).astype(o_ref.dtype)


def fused_conv2_conv3(comps, ncomp, w2, shift2, w3, shift3, res, wd, sd, *,
                      stride, ho, wo):
    n = comps.shape[0] // ncomp
    hc, wc, cp = comps.shape[1:]
    c4p = w3.shape[1]
    cr = res.shape[-1]
    has_down = wd is not None

    in_specs = [
        pl.BlockSpec((ncomp, hc, wc, cp), lambda i: (i, 0, 0, 0)),
        pl.BlockSpec((9, cp, cp), lambda i: (0, 0, 0)),
        pl.BlockSpec((1, cp), lambda i: (0, 0)),
        pl.BlockSpec((cp, c4p), lambda i: (0, 0)),
        pl.BlockSpec((1, c4p), lambda i: (0, 0)),
        pl.BlockSpec((1, ho * wo, cr), lambda i: (i, 0, 0)),
    ]
    args = [comps, w2, shift2.reshape(1, cp), w3, shift3.reshape(1, c4p), res]
    if has_down:
        in_specs += [pl.BlockSpec((cr, c4p), lambda i: (0, 0)),
                     pl.BlockSpec((1, c4p), lambda i: (0, 0))]
        args += [wd, sd.reshape(1, c4p)]

    return pl.pallas_call(
        functools.partial(_fused_conv_kernel, stride=stride, ho=ho, wo=wo,
                          has_down=has_down),
        out_shape=jax.ShapeDtypeStruct((n, ho * wo, c4p), jnp.float32),
        grid=(n,),
        in_specs=in_specs,
        out_specs=pl.BlockSpec((1, ho * wo, c4p), lambda i: (i, 0, 0)),
        compiler_params=pltpu.CompilerParams(dimension_semantics=("parallel",)),
    )(*args)


# ----------------------------- parameter setup -----------------------------
def xavier_uniform(key, cout, cin, kh, kw):
    fan_in = cin * kh * kw
    fan_out = cout * kh * kw
    bound = math.sqrt(6.0 / (fan_in + fan_out))
    return jax.random.uniform(key, (cout, cin, kh, kw), jnp.float32, -bound, bound)


def fold_bn(bias, gamma, beta, mean, var, eps=1e-5):
    """Fold conv bias + eval-mode BatchNorm into per-channel (scale, shift)."""
    scale = gamma / jnp.sqrt(var + eps)
    shift = (bias - mean) * scale + beta
    return scale, shift


def make_block_params(key, in_channels, channels, is_conv_block):
    ks = jax.random.split(key, 4)
    p = {}

    def conv_bn(k, cout, cin, kh, kw):
        w = xavier_uniform(k, cout, cin, kh, kw)
        b = jnp.full((cout,), 0.01, jnp.float32)
        gamma = jnp.ones((cout,), jnp.float32)   # default-init BatchNorm2d
        beta = jnp.zeros((cout,), jnp.float32)
        mean = jnp.zeros((cout,), jnp.float32)
        var = jnp.ones((cout,), jnp.float32)
        scale, shift = fold_bn(b, gamma, beta, mean, var)
        return w, scale, shift

    p["conv1_w"], p["bn1_scale"], p["bn1_shift"] = conv_bn(ks[0], channels, in_channels, 1, 1)
    p["conv2_w"], p["bn2_scale"], p["bn2_shift"] = conv_bn(ks[1], channels, channels, 3, 3)
    p["conv3_w"], p["bn3_scale"], p["bn3_shift"] = conv_bn(ks[2], 4 * channels, channels, 1, 1)
    if is_conv_block:
        p["down_w"], p["down_bn_scale"], p["down_bn_shift"] = conv_bn(
            ks[3], 4 * channels, in_channels, 1, 1)
    return p


def prepare_kernel_params(p, in_channels, channels, is_conv_block):
    """Fold BN scale into weights, pad channel dims to 128 lanes, cast to bf16."""
    cin, c = in_channels, channels
    c4 = 4 * c
    cp, c4p = _round_up(c, LANE), _round_up(c4, LANE)
    bf = jnp.bfloat16
    kp = {}

    w1 = p["conv1_w"][:, :, 0, 0].T * p["bn1_scale"][None, :]             # (Cin, C)
    kp["w1f"] = _pad_to(w1, (cin, cp)).astype(bf)
    kp["shift1"] = _pad_to(p["bn1_shift"], (cp,))

    w2 = jnp.transpose(p["conv2_w"], (2, 3, 1, 0)).reshape(9, c, c)       # (9, Cin, Cout)
    w2 = w2 * p["bn2_scale"][None, None, :]
    kp["w2f"] = _pad_to(w2, (9, cp, cp)).astype(bf)
    kp["shift2"] = _pad_to(p["bn2_shift"], (cp,))

    w3 = p["conv3_w"][:, :, 0, 0].T * p["bn3_scale"][None, :]             # (C, 4C)
    kp["w3f"] = _pad_to(w3, (cp, c4p)).astype(bf)
    kp["shift3"] = _pad_to(p["bn3_shift"], (c4p,))

    if is_conv_block:
        wd = p["down_w"][:, :, 0, 0].T * p["down_bn_scale"][None, :]      # (Cin, 4C)
        kp["wdf"] = _pad_to(wd, (cin, c4p)).astype(bf)
        kp["shiftd"] = _pad_to(p["down_bn_shift"], (c4p,))
    return kp


# ----------------------------- forward pass -----------------------------
@functools.partial(jax.jit, static_argnums=(2, 3, 4))
def block_forward(kp, x_nchw, stride, is_conv_block, channels):
    x = jnp.transpose(x_nchw, (0, 2, 3, 1))          # NHWC
    n, h, w, cin = x.shape
    cp = kp["w1f"].shape[1]
    c4p = kp["w3f"].shape[1]
    c4 = 4 * channels
    s = stride
    ho, wo = (h - 1) // s + 1, (w - 1) // s + 1
    xb = x.astype(jnp.bfloat16)

    # conv1 (1x1) + bn1 + relu -> bf16 (BN scale folded into w1f).
    h1 = matmul_shift(xb.reshape(n * h * w, cin), kp["w1f"], kp["shift1"],
                      relu=True, out_dtype=jnp.bfloat16)
    h1 = h1.reshape(n, h, w, cp)

    # Spatial zero pad (+1 halo) and stride-s polyphase split: ~1x copy instead
    # of the 9x im2col materialization; the nine taps are sliced in-kernel.
    h1p = jnp.pad(h1, ((0, 0), (1, 1), (1, 1), (0, 0)))
    if s == 1:
        comps = h1p[:, None]
    else:
        hc = max(len(range(r, h + 2, s)) for r in range(s))
        wc = max(len(range(c, w + 2, s)) for c in range(s))
        parts = []
        for r in range(s):
            for c in range(s):
                parts.append(_pad_to(h1p[:, r::s, c::s, :], (n, hc, wc, cp)))
        comps = jnp.stack(parts, axis=1)
    ncomp, hc, wc = comps.shape[1], comps.shape[2], comps.shape[3]
    comps = comps.reshape(n * ncomp, hc, wc, cp)

    # Residual branch inputs (row-flattened).
    if is_conv_block:
        xs = xb[:, :(ho - 1) * s + 1:s, :(wo - 1) * s + 1:s, :]
        res = xs.reshape(n, ho * wo, cin)
        wd, sd = kp["wdf"], kp["shiftd"]
    else:
        assert cin == c4 and s == 1, (
            "identity block requires in_channels == 4*channels and stride == 1")
        res = _pad_to(xb, (n, h, w, c4p)).reshape(n, h * w, c4p)
        wd = sd = None

    out = fused_conv2_conv3(comps, ncomp, kp["w2f"], kp["shift2"],
                            kp["w3f"], kp["shift3"], res, wd, sd,
                            stride=s, ho=ho, wo=wo)        # (N, Ho*Wo, C4p) f32
    out = out.reshape(n, ho, wo, c4p)[:, :, :, :c4]
    return jnp.transpose(out, (0, 3, 1, 2))                # back to NCHW


# ----------------------------- pure-JAX reference -----------------------------
def ref_forward(params, x, stride, is_conv_block):
    def conv(x, w, stride, pad):
        return jax.lax.conv_general_dilated(
            x, w, (stride, stride), [(pad, pad), (pad, pad)],
            dimension_numbers=("NCHW", "OIHW", "NCHW"))

    def affine(y, scale, shift, relu):
        y = y * scale.reshape(1, -1, 1, 1) + shift.reshape(1, -1, 1, 1)
        return jnp.maximum(y, 0.0) if relu else y

    out = affine(conv(x, params["conv1_w"], 1, 0), params["bn1_scale"], params["bn1_shift"], True)
    out = affine(conv(out, params["conv2_w"], stride, 1), params["bn2_scale"], params["bn2_shift"], True)
    out = affine(conv(out, params["conv3_w"], 1, 0), params["bn3_scale"], params["bn3_shift"], False)
    if is_conv_block:
        residual = affine(conv(x, params["down_w"], stride, 0),
                          params["down_bn_scale"], params["down_bn_shift"], False)
    else:
        residual = x
    return jnp.maximum(out + residual, 0.0)


# ----------------------------- main -----------------------------
if __name__ == "__main__":
    key = jax.random.PRNGKey(0)
    kA_p, kA_x, kB_p, kB_x = jax.random.split(key, 4)

    # Config A: conv block (projection shortcut), stride 2.
    in_ch, ch, stride = 4, 4, 2
    raw_a = make_block_params(kA_p, in_ch, ch, is_conv_block=True)
    kp_a = prepare_kernel_params(raw_a, in_ch, ch, is_conv_block=True)
    x_a = jax.random.normal(kA_x, (2, in_ch, 16, 16), jnp.float32)
    y_a = jax.block_until_ready(block_forward(kp_a, x_a, stride, True, ch))
    y_a_ref = ref_forward(raw_a, x_a, stride, True)
    assert y_a.shape == (2, 4 * ch, 8, 8), y_a.shape
    err_a = float(jnp.max(jnp.abs(y_a - y_a_ref)))
    assert err_a < 1e-1, f"conv-block mismatch {err_a}"   # bf16 operand tolerance

    # Config B: identity block (in_channels == 4*channels, stride 1).
    raw_b = make_block_params(kB_p, 16, 4, is_conv_block=False)
    kp_b = prepare_kernel_params(raw_b, 16, 4, is_conv_block=False)
    x_b = jax.random.normal(kB_x, (2, 16, 16, 16), jnp.float32)
    y_b = jax.block_until_ready(block_forward(kp_b, x_b, 1, False, 4))
    y_b_ref = ref_forward(raw_b, x_b, 1, False)
    assert y_b.shape == (2, 16, 16, 16), y_b.shape
    err_b = float(jnp.max(jnp.abs(y_b - y_b_ref)))
    assert err_b < 1e-1, f"identity-block mismatch {err_b}"

    print("KERNEL_OK")
</pallas_src>

<mosaic_0001>
module attributes {stable_mosaic.version = 11 : i64} {
  func.func @_mm_shift_kernel(%arg0: i32, %arg1: i32, %arg2: memref<512x4xbf16, #tpu.memory_space<vmem>>, %arg3: memref<4x128xbf16, #tpu.memory_space<vmem>>, %arg4: memref<1x128xf32, #tpu.memory_space<vmem>>, %arg5: memref<512x128xbf16, #tpu.memory_space<vmem>>) attributes {dimension_semantics = [#tpu.dimension_semantics<parallel>, #tpu.dimension_semantics<parallel>], iteration_bounds = array<i64: 1, 1>, scalar_prefetch = 0 : i64, scratch_operands = 0 : i64, tpu.core_type = #tpu.core_type<tc>, window_params = [{transform_indices = @transform_0, window_bounds = array<i64: 512, 4>}, {transform_indices = @transform_1, window_bounds = array<i64: 4, 128>}, {transform_indices = @transform_2, window_bounds = array<i64: 1, 128>}, {transform_indices = @transform_3, window_bounds = array<i64: 512, 128>}]} {
    %c0 = arith.constant 0 : index
    %c0_0 = arith.constant 0 : index
    %0 = vector.load %arg2[%c0, %c0_0] : memref<512x4xbf16, #tpu.memory_space<vmem>>, vector<512x4xbf16>
    %c0_1 = arith.constant 0 : index
    %c0_2 = arith.constant 0 : index
    %1 = vector.load %arg3[%c0_1, %c0_2] : memref<4x128xbf16, #tpu.memory_space<vmem>>, vector<4x128xbf16>
    %cst = arith.constant dense<0.000000e+00> : vector<512x128xf32>
    %2 = tpu.matmul %0, %1, %cst {dimension_numbers = #tpu.dot_dimension_numbers<[1], [0], [0], [1], [0, 0, 1, 1], [], []>} : vector<512x4xbf16>, vector<4x128xbf16>, vector<512x128xf32> -> vector<512x128xf32>
    %c0_3 = arith.constant 0 : index
    %c0_4 = arith.constant 0 : index
    %3 = vector.load %arg4[%c0_3, %c0_4] : memref<1x128xf32, #tpu.memory_space<vmem>>, vector<1x128xf32>
    %4 = vector.broadcast %3 : vector<1x128xf32> to vector<512x128xf32>
    %5 = arith.addf %2, %4 : vector<512x128xf32>
    %cst_5 = arith.constant 0.000000e+00 : f32
    %6 = vector.broadcast %cst_5 : f32 to vector<512x128xf32>
    %7 = arith.maximumf %5, %6 : vector<512x128xf32>
    %8 = arith.truncf %7 : vector<512x128xf32> to vector<512x128xbf16>
    %c0_6 = arith.constant 0 : index
    %c0_7 = arith.constant 0 : index
    %9 = vector.load %arg5[%c0_6, %c0_7] : memref<512x128xbf16, #tpu.memory_space<vmem>>, vector<512x128xbf16>
    tpu.vector_store %arg5[%c0_6, %c0_7], %8 {strides = array<i32>} : memref<512x128xbf16, #tpu.memory_space<vmem>>, vector<512x128xbf16>,
    return
  }
  func.func @transform_0(%arg0: i32, %arg1: i32) -> (i32, i32) {
    %c0_i32 = arith.constant 0 : i32
    %c0_i32_0 = arith.constant 0 : i32
    return %arg0, %c0_i32 : i32, i32
  }
  func.func @transform_1(%arg0: i32, %arg1: i32) -> (i32, i32) {
    %c0_i32 = arith.constant 0 : i32
    %c0_i32_0 = arith.constant 0 : i32
    return %c0_i32, %arg1 : i32, i32
  }
  func.func @transform_2(%arg0: i32, %arg1: i32) -> (i32, i32) {
    %c0_i32 = arith.constant 0 : i32
    %c0_i32_0 = arith.constant 0 : i32
    return %c0_i32, %arg1 : i32, i32
  }
  func.func @transform_3(%arg0: i32, %arg1: i32) -> (i32, i32) {
    %c0_i32 = arith.constant 0 : i32
    return %arg0, %arg1 : i32, i32
  }
}

module attributes {stable_mosaic.version = 11 : i64} {
  func.func @_fused_conv_kernel(%arg0: i32, %arg1: memref<4x9x9x128xbf16, #tpu.memory_space<vmem>>, %arg2: memref<9x128x128xbf16, #tpu.memory_space<vmem>>, %arg3: memref<1x128xf32, #tpu.memory_space<vmem>>, %arg4: memref<128x128xbf16, #tpu.memory_space<vmem>>, %arg5: memref<1x128xf32, #tpu.memory_space<vmem>>, %arg6: memref<1x64x4xbf16, #tpu.memory_space<vmem>>, %arg7: memref<4x128xbf16, #tpu.memory_space<vmem>>, %arg8: memref<1x128xf32, #tpu.memory_space<vmem>>, %arg9: memref<1x64x128xf32, #tpu.memory_space<vmem>>) attributes {dimension_semantics = [#tpu.dimension_semantics<parallel>], iteration_bounds = array<i64: 2>, scalar_prefetch = 0 : i64, scratch_operands = 0 : i64, tpu.core_type = #tpu.core_type<tc>, window_params = [{transform_indices = @transform_0, window_bounds = array<i64: 4, 9, 9, 128>}, {pipeline_mode = #tpu.pipeline_mode<synchronous>, transform_indices = @transform_1, window_bounds = array<i64: 9, 128, 128>}, {pipeline_mode = #tpu.pipeline_mode<synchronous>, transform_indices = @transform_2, window_bounds = array<i64: 1, 128>}, {pipeline_mode = #tpu.pipeline_mode<synchronous>, transform_indices = @transform_3, window_bounds = array<i64: 128, 128>}, {pipeline_mode = #tpu.pipeline_mode<synchronous>, transform_indices = @transform_4, window_bounds = array<i64: 1, 128>}, {transform_indices = @transform_5, window_bounds = array<i64: 1, 64, 4>}, {pipeline_mode = #tpu.pipeline_mode<synchronous>, transform_indices = @transform_6, window_bounds = array<i64: 4, 128>}, {pipeline_mode = #tpu.pipeline_mode<synchronous>, transform_indices = @transform_7, window_bounds = array<i64: 1, 128>}, {transform_indices = @transform_8, window_bounds = array<i64: 1, 64, 128>}]} {
    %cst = arith.constant 0.000000e+00 : f32
    %0 = vector.broadcast %cst : f32 to vector<64x128xf32>
    %c0 = arith.constant 0 : index
    %c0_0 = arith.constant 0 : index
    %c0_1 = arith.constant 0 : index
    %c0_2 = arith.constant 0 : index
    %1 = vector.load %arg1[%c0, %c0_0, %c0_1, %c0_2] : memref<4x9x9x128xbf16, #tpu.memory_space<vmem>>, vector<1x8x8x128xbf16>
    %2 = vector.shape_cast %1 : vector<1x8x8x128xbf16> to vector<8x8x128xbf16>
    %3 = vector.shape_cast %2 : vector<8x8x128xbf16> to vector<64x128xbf16>
    %c0_3 = arith.constant 0 : index
    %c0_4 = arith.constant 0 : index
    %c0_5 = arith.constant 0 : index
    %4 = vector.load %arg2[%c0_3, %c0_4, %c0_5] : memref<9x128x128xbf16, #tpu.memory_space<vmem>>, vector<1x128x128xbf16>
    %5 = vector.shape_cast %4 : vector<1x128x128xbf16> to vector<128x128xbf16>
    %cst_6 = arith.constant dense<0.000000e+00> : vector<64x128xf32>
    %6 = tpu.matmul %3, %5, %cst_6 {dimension_numbers = #tpu.dot_dimension_numbers<[1], [0], [0], [1], [0, 0, 1, 1], [], []>} : vector<64x128xbf16>, vector<128x128xbf16>, vector<64x128xf32> -> vector<64x128xf32>
    %7 = arith.addf %0, %6 : vector<64x128xf32>
    %c1 = arith.constant 1 : index
    %c0_7 = arith.constant 0 : index
    %c0_8 = arith.constant 0 : index
    %c0_9 = arith.constant 0 : index
    %8 = vector.load %arg1[%c1, %c0_7, %c0_8, %c0_9] : memref<4x9x9x128xbf16, #tpu.memory_space<vmem>>, vector<1x8x8x128xbf16>
    %9 = vector.shape_cast %8 : vector<1x8x8x128xbf16> to vector<8x8x128xbf16>
    %10 = vector.shape_cast %9 : vector<8x8x128xbf16> to vector<64x128xbf16>
    %c1_10 = arith.constant 1 : index
    %c0_11 = arith.constant 0 : index
    %c0_12 = arith.constant 0 : index
    %11 = vector.load %arg2[%c1_10, %c0_11, %c0_12] : memref<9x128x128xbf16, #tpu.memory_space<vmem>>, vector<1x128x128xbf16>
    %12 = vector.shape_cast %11 : vector<1x128x128xbf16> to vector<128x128xbf16>
    %cst_13 = arith.constant dense<0.000000e+00> : vector<64x128xf32>
    %13 = tpu.matmul %10, %12, %cst_13 {dimension_numbers = #tpu.dot_dimension_numbers<[1], [0], [0], [1], [0, 0, 1, 1], [], []>} : vector<64x128xbf16>, vector<128x128xbf16>, vector<64x128xf32> -> vector<64x128xf32>
    %14 = arith.addf %7, %13 : vector<64x128xf32>
    %c0_14 = arith.constant 0 : index
    %c0_15 = arith.constant 0 : index
    %c1_16 = arith.constant 1 : index
    %c0_17 = arith.constant 0 : index
    %15 = vector.load %arg1[%c0_14, %c0_15, %c1_16, %c0_17] : memref<4x9x9x128xbf16, #tpu.memory_space<vmem>>, vector<1x8x8x128xbf16>
    %16 = vector.shape_cast %15 : vector<1x8x8x128xbf16> to vector<8x8x128xbf16>
    %17 = vector.shape_cast %16 : vector<8x8x128xbf16> to vector<64x128xbf16>
    %c2 = arith.constant 2 : index
    %c0_18 = arith.constant 0 : index
    %c0_19 = arith.constant 0 : index
    %18 = vector.load %arg2[%c2, %c0_18, %c0_19] : memref<9x128x128xbf16, #tpu.memory_space<vmem>>, vector<1x128x128xbf16>
    %19 = vector.shape_cast %18 : vector<1x128x128xbf16> to vector<128x128xbf16>
    %cst_20 = arith.constant dense<0.000000e+00> : vector<64x128xf32>
    %20 = tpu.matmul %17, %19, %cst_20 {dimension_numbers = #tpu.dot_dimension_numbers<[1], [0], [0], [1], [0, 0, 1, 1], [], []>} : vector<64x128xbf16>, vector<128x128xbf16>, vector<64x128xf32> -> vector<64x128xf32>
    %21 = arith.addf %14, %20 : vector<64x128xf32>
    %c2_21 = arith.constant 2 : index
    %c0_22 = arith.constant 0 : index
    %c0_23 = arith.constant 0 : index
    %c0_24 = arith.constant 0 : index
    %22 = vector.load %arg1[%c2_21, %c0_22, %c0_23, %c0_24] : memref<4x9x9x128xbf16, #tpu.memory_space<vmem>>, vector<1x8x8x128xbf16>
    %23 = vector.shape_cast %22 : vector<1x8x8x128xbf16> to vector<8x8x128xbf16>
    %24 = vector.shape_cast %23 : vector<8x8x128xbf16> to vector<64x128xbf16>
    %c3 = arith.constant 3 : index
    %c0_25 = arith.constant 0 : index
    %c0_26 = arith.constant 0 : index
    %25 = vector.load %arg2[%c3, %c0_25, %c0_26] : memref<9x128x128xbf16, #tpu.memory_space<vmem>>, vector<1x128x128xbf16>
    %26 = vector.shape_cast %25 : vector<1x128x128xbf16> to vector<128x128xbf16>
    %cst_27 = arith.constant dense<0.000000e+00> : vector<64x128xf32>
    %27 = tpu.matmul %24, %26, %cst_27 {dimension_numbers = #tpu.dot_dimension_numbers<[1], [0], [0], [1], [0, 0, 1, 1], [], []>} : vector<64x128xbf16>, vector<128x128xbf16>, vector<64x128xf32> -> vector<64x128xf32>
    %28 = arith.addf %21, %27 : vector<64x128xf32>
    %c3_28 = arith.constant 3 : index
    %c0_29 = arith.constant 0 : index
    %c0_30 = arith.constant 0 : index
    %c0_31 = arith.constant 0 : index
    %29 = vector.load %arg1[%c3_28, %c0_29, %c0_30, %c0_31] : memref<4x9x9x128xbf16, #tpu.memory_space<vmem>>, vector<1x8x8x128xbf16>
    %30 = vector.shape_cast %29 : vector<1x8x8x128xbf16> to vector<8x8x128xbf16>
    %31 = vector.shape_cast %30 : vector<8x8x128xbf16> to vector<64x128xbf16>
    %c4 = arith.constant 4 : index
    %c0_32 = arith.constant 0 : index
    %c0_33 = arith.constant 0 : index
    %32 = vector.load %arg2[%c4, %c0_32, %c0_33] : memref<9x128x128xbf16, #tpu.memory_space<vmem>>, vector<1x128x128xbf16>
    %33 = vector.shape_cast %32 : vector<1x128x128xbf16> to vector<128x128xbf16>
    %cst_34 = arith.constant dense<0.000000e+00> : vector<64x128xf32>
    %34 = tpu.matmul %31, %33, %cst_34 {dimension_numbers = #tpu.dot_dimension_numbers<[1], [0], [0], [1], [0, 0, 1, 1], [], []>} : vector<64x128xbf16>, vector<128x128xbf16>, vector<64x128xf32> -> vector<64x128xf32>
    %35 = arith.addf %28, %34 : vector<64x128xf32>
    %c2_35 = arith.constant 2 : index
    %c0_36 = arith.constant 0 : index
    %c1_37 = arith.constant 1 : index
    %c0_38 = arith.constant 0 : index
    %36 = vector.load %arg1[%c2_35, %c0_36, %c1_37, %c0_38] : memref<4x9x9x128xbf16, #tpu.memory_space<vmem>>, vector<1x8x8x128xbf16>
    %37 = vector.shape_cast %36 : vector<1x8x8x128xbf16> to vector<8x8x128xbf16>
    %38 = vector.shape_cast %37 : vector<8x8x128xbf16> to vector<64x128xbf16>
    %c5 = arith.constant 5 : index
    %c0_39 = arith.constant 0 : index
    %c0_40 = arith.constant 0 : index
    %39 = vector.load %arg2[%c5, %c0_39, %c0_40] : memref<9x128x128xbf16, #tpu.memory_space<vmem>>, vector<1x128x128xbf16>
    %40 = vector.shape_cast %39 : vector<1x128x128xbf16> to vector<128x128xbf16>
    %cst_41 = arith.constant dense<0.000000e+00> : vector<64x128xf32>
    %41 = tpu.matmul %38, %40, %cst_41 {dimension_numbers = #tpu.dot_dimension_numbers<[1], [0], [0], [1], [0, 0, 1, 1], [], []>} : vector<64x128xbf16>, vector<128x128xbf16>, vector<64x128xf32> -> vector<64x128xf32>
    %42 = arith.addf %35, %41 : vector<64x128xf32>
    %c0_42 = arith.constant 0 : index
    %c1_43 = arith.constant 1 : index
    %c0_44 = arith.constant 0 : index
    %c0_45 = arith.constant 0 : index
    %43 = vector.load %arg1[%c0_42, %c1_43, %c0_44, %c0_45] : memref<4x9x9x128xbf16, #tpu.memory_space<vmem>>, vector<1x8x8x128xbf16>
    %44 = vector.shape_cast %43 : vector<1x8x8x128xbf16> to vector<8x8x128xbf16>
    %45 = vector.shape_cast %44 : vector<8x8x128xbf16> to vector<64x128xbf16>
    %c6 = arith.constant 6 : index
    %c0_46 = arith.constant 0 : index
    %c0_47 = arith.constant 0 : index
    %46 = vector.load %arg2[%c6, %c0_46, %c0_47] : memref<9x128x128xbf16, #tpu.memory_space<vmem>>, vector<1x128x128xbf16>
    %47 = vector.shape_cast %46 : vector<1x128x128xbf16> to vector<128x128xbf16>
    %cst_48 = arith.constant dense<0.000000e+00> : vector<64x128xf32>
    %48 = tpu.matmul %45, %47, %cst_48 {dimension_numbers = #tpu.dot_dimension_numbers<[1], [0], [0], [1], [0, 0, 1, 1], [], []>} : vector<64x128xbf16>, vector<128x128xbf16>, vector<64x128xf32> -> vector<64x128xf32>
    %49 = arith.addf %42, %48 : vector<64x128xf32>
    %c1_49 = arith.constant 1 : index
    %c1_50 = arith.constant 1 : index
    %c0_51 = arith.constant 0 : index
    %c0_52 = arith.constant 0 : index
    %50 = vector.load %arg1[%c1_49, %c1_50, %c0_51, %c0_52] : memref<4x9x9x128xbf16, #tpu.memory_space<vmem>>, vector<1x8x8x128xbf16>
    %51 = vector.shape_cast %50 : vector<1x8x8x128xbf16> to vector<8x8x128xbf16>
    %52 = vector.shape_cast %51 : vector<8x8x128xbf16> to vector<64x128xbf16>
    %c7 = arith.constant 7 : index
    %c0_53 = arith.constant 0 : index
    %c0_54 = arith.constant 0 : index
    %53 = vector.load %arg2[%c7, %c0_53, %c0_54] : memref<9x128x128xbf16, #tpu.memory_space<vmem>>, vector<1x128x128xbf16>
    %54 = vector.shape_cast %53 : vector<1x128x128xbf16> to vector<128x128xbf16>
    %cst_55 = arith.constant dense<0.000000e+00> : vector<64x128xf32>
    %55 = tpu.matmul %52, %54, %cst_55 {dimension_numbers = #tpu.dot_dimension_numbers<[1], [0], [0], [1], [0, 0, 1, 1], [], []>} : vector<64x128xbf16>, vector<128x128xbf16>, vector<64x128xf32> -> vector<64x128xf32>
    %56 = arith.addf %49, %55 : vector<64x128xf32>
    %c0_56 = arith.constant 0 : index
    %c1_57 = arith.constant 1 : index
    %c1_58 = arith.constant 1 : index
    %c0_59 = arith.constant 0 : index
    %57 = vector.load %arg1[%c0_56, %c1_57, %c1_58, %c0_59] : memref<4x9x9x128xbf16, #tpu.memory_space<vmem>>, vector<1x8x8x128xbf16>
    %58 = vector.shape_cast %57 : vector<1x8x8x128xbf16> to vector<8x8x128xbf16>
    %59 = vector.shape_cast %58 : vector<8x8x128xbf16> to vector<64x128xbf16>
    %c8 = arith.constant 8 : index
    %c0_60 = arith.constant 0 : index
    %c0_61 = arith.constant 0 : index
    %60 = vector.load %arg2[%c8, %c0_60, %c0_61] : memref<9x128x128xbf16, #tpu.memory_space<vmem>>, vector<1x128x128xbf16>
    %61 = vector.shape_cast %60 : vector<1x128x128xbf16> to vector<128x128xbf16>
    %cst_62 = arith.constant dense<0.000000e+00> : vector<64x128xf32>
    %62 = tpu.matmul %59, %61, %cst_62 {dimension_numbers = #tpu.dot_dimension_numbers<[1], [0], [0], [1], [0, 0, 1, 1], [], []>} : vector<64x128xbf16>, vector<128x128xbf16>, vector<64x128xf32> -> vector<64x128xf32>
    %63 = arith.addf %56, %62 : vector<64x128xf32>
    %c0_63 = arith.constant 0 : index
    %c0_64 = arith.constant 0 : index
    %64 = vector.load %arg3[%c0_63, %c0_64] : memref<1x128xf32, #tpu.memory_space<vmem>>, vector<1x128xf32>
    %65 = vector.broadcast %64 : vector<1x128xf32> to vector<64x128xf32>
    %66 = arith.addf %63, %65 : vector<64x128xf32>
    %cst_65 = arith.constant 0.000000e+00 : f32
    %67 = vector.broadcast %cst_65 : f32 to vector<64x128xf32>
    %68 = arith.maximumf %66, %67 : vector<64x128xf32>
    %69 = arith.truncf %68 : vector<64x128xf32> to vector<64x128xbf16>
    %c0_66 = arith.constant 0 : index
    %c0_67 = arith.constant 0 : index
    %70 = vector.load %arg4[%c0_66, %c0_67] : memref<128x128xbf16, #tpu.memory_space<vmem>>, vector<128x128xbf16>
    %cst_68 = arith.constant dense<0.000000e+00> : vector<64x128xf32>
    %71 = tpu.matmul %69, %70, %cst_68 {dimension_numbers = #tpu.dot_dimension_numbers<[1], [0], [0], [1], [0, 0, 1, 1], [], []>} : vector<64x128xbf16>, vector<128x128xbf16>, vector<64x128xf32> -> vector<64x128xf32>
    %c0_69 = arith.constant 0 : index
    %c0_70 = arith.constant 0 : index
    %72 = vector.load %arg5[%c0_69, %c0_70] : memref<1x128xf32, #tpu.memory_space<vmem>>, vector<1x128xf32>
    %73 = vector.broadcast %72 : vector<1x128xf32> to vector<64x128xf32>
    %74 = arith.addf %71, %73 : vector<64x128xf32>
    %c0_71 = arith.constant 0 : index
    %c0_72 = arith.constant 0 : index
    %c0_73 = arith.constant 0 : index
    %75 = vector.load %arg6[%c0_71, %c0_72, %c0_73] : memref<1x64x4xbf16, #tpu.memory_space<vmem>>, vector<1x64x4xbf16>
    %76 = vector.shape_cast %75 : vector<1x64x4xbf16> to vector<64x4xbf16>
    %c0_74 = arith.constant 0 : index
    %c0_75 = arith.constant 0 : index
    %77 = vector.load %arg7[%c0_74, %c0_75] : memref<4x128xbf16, #tpu.memory_space<vmem>>, vector<4x128xbf16>
    %cst_76 = arith.constant dense<0.000000e+00> : vector<64x128xf32>
    %78 = tpu.matmul %76, %77, %cst_76 {dimension_numbers = #tpu.dot_dimension_numbers<[1], [0], [0], [1], [0, 0, 1, 1], [], []>} : vector<64x4xbf16>, vector<4x128xbf16>, vector<64x128xf32> -> vector<64x128xf32>
    %79 = arith.addf %74, %78 : vector<64x128xf32>
    %c0_77 = arith.constant 0 : index
    %c0_78 = arith.constant 0 : index
    %80 = vector.load %arg8[%c0_77, %c0_78] : memref<1x128xf32, #tpu.memory_space<vmem>>, vector<1x128xf32>
    %81 = vector.broadcast %80 : vector<1x128xf32> to vector<64x128xf32>
    %82 = arith.addf %79, %81 : vector<64x128xf32>
    %cst_79 = arith.constant 0.000000e+00 : f32
    %83 = vector.broadcast %cst_79 : f32 to vector<64x128xf32>
    %84 = arith.maximumf %82, %83 : vector<64x128xf32>
    %c0_80 = arith.constant 0 : index
    %c0_81 = arith.constant 0 : index
    %c0_82 = arith.constant 0 : index
    %85 = vector.load %arg9[%c0_80, %c0_81, %c0_82] : memref<1x64x128xf32, #tpu.memory_space<vmem>>, vector<1x64x128xf32>
    %86 = vector.shape_cast %85 : vector<1x64x128xf32> to vector<64x128xf32>
    %87 = vector.shape_cast %84 : vector<64x128xf32> to vector<1x64x128xf32>
    tpu.vector_store %arg9[%c0_80, %c0_81, %c0_82], %87 {strides = array<i32>} : memref<1x64x128xf32, #tpu.memory_space<vmem>>, vector<1x64x128xf32>,
    return
  }
  func.func @transform_0(%arg0: i32) -> (i32, i32, i32, i32) {
    %c0_i32 = arith.constant 0 : i32
    %c0_i32_0 = arith.constant 0 : i32
    %c0_i32_1 = arith.constant 0 : i32
    %c0_i32_2 = arith.constant 0 : i32
    return %arg0, %c0_i32, %c0_i32_0, %c0_i32_1 : i32, i32, i32, i32
  }
  func.func @transform_1(%arg0: i32) -> (i32, i32, i32) {
    %c0_i32 = arith.constant 0 : i32
    %c0_i32_0 = arith.constant 0 : i32
    %c0_i32_1 = arith.constant 0 : i32
    %c0_i32_2 = arith.constant 0 : i32
    return %c0_i32, %c0_i32_0, %c0_i32_1 : i32, i32, i32
  }
  func.func @transform_2(%arg0: i32) -> (i32, i32) {
    %c0_i32 = arith.constant 0 : i32
    %c0_i32_0 = arith.constant 0 : i32
    %c0_i32_1 = arith.constant 0 : i32
    return %c0_i32, %c0_i32_0 : i32, i32
  }
  func.func @transform_3(%arg0: i32) -> (i32, i32) {
    %c0_i32 = arith.constant 0 : i32
    %c0_i32_0 = arith.constant 0 : i32
    %c0_i32_1 = arith.constant 0 : i32
    return %c0_i32, %c0_i32_0 : i32, i32
  }
  func.func @transform_4(%arg0: i32) -> (i32, i32) {
    %c0_i32 = arith.constant 0 : i32
    %c0_i32_0 = arith.constant 0 : i32
    %c0_i32_1 = arith.constant 0 : i32
    return %c0_i32, %c0_i32_0 : i32, i32
  }
  func.func @transform_5(%arg0: i32) -> (i32, i32, i32) {
    %c0_i32 = arith.constant 0 : i32
    %c0_i32_0 = arith.constant 0 : i32
    %c0_i32_1 = arith.constant 0 : i32
    return %arg0, %c0_i32, %c0_i32_0 : i32, i32, i32
  }
  func.func @transform_6(%arg0: i32) -> (i32, i32) {
    %c0_i32 = arith.constant 0 : i32
    %c0_i32_0 = arith.constant 0 : i32
    %c0_i32_1 = arith.constant 0 : i32
    return %c0_i32, %c0_i32_0 : i32, i32
  }
  func.func @transform_7(%arg0: i32) -> (i32, i32) {
    %c0_i32 = arith.constant 0 : i32
    %c0_i32_0 = arith.constant 0 : i32
    %c0_i32_1 = arith.constant 0 : i32
    return %c0_i32, %c0_i32_0 : i32, i32
  }
  func.func @transform_8(%arg0: i32) -> (i32, i32, i32) {
    %c0_i32 = arith.constant 0 : i32
    %c0_i32_0 = arith.constant 0 : i32
    %c0_i32_1 = arith.constant 0 : i32
    return %arg0, %c0_i32, %c0_i32_0 : i32, i32, i32
  }
}

</mosaic_0001>

<bundles_post_ra>
// kernel: block_forward.2
= control target key start
LH: loop header
LB: loop body
LE: loop exit
PB: predicated region body
PF: predicated region fallthrough
CT: control target
= control target key end

     0   :  { %vm344_vm0 = vcmask 1041408   ;;  %vm247_vm1 = vcmask 31744   ;;  %s1860_s1 = inlined_call_operand.vmem [shape: bf16[4,128], index: 1, kind: input, shape index: {}]   ;;  %s1861_s0 = inlined_call_operand.vmem [shape: bf16[512,4], index: 0, kind: input, shape index: {}]   ;;  %s1862_s2 = inlined_call_operand.vmem [shape: f32[1,128], index: 2, kind: input, shape index: {}]   ;;  %s1863_s3 = inlined_call_operand.vmem [shape: bf16[512,128], index: 3, kind: output, shape index: {}]  }
   0x1   :  { %v79_v0 = vld [vmem:[%s1860_s1] sm:$0x3]  ;;  %v1514_v4 = vld [vmem:[%s1861_s0 + $0x8] sm:$0xff]   ;;  %v1516_v6 = vld [vmem:[%s1861_s0 + $0x10] sm:$0xff]  }
   0x2   :  { %1510 = vmatprep.subr.msk.bf16.mxu0 %vm344_vm0, %v79_v0  ;;  %1511 = vmatprep.subr.msk.bf16.mxu1 %vm344_vm0, %v79_v0  ;;  %v346_v1 = vsel %vm344_vm0, %v79_v0, 0  ;;  %v1512_v2 = vld [vmem:[%s1861_s0] sm:$0xff]   ;;  %v1515_v5 = vld [vmem:[%s1861_s0 + $0x88] sm:$0xff]   ;;  %v1517_v7 = vld [vmem:[%s1861_s0 + $0x90] sm:$0xff]  }
   0x3   :  { %1443 = vmatpush3.bf16.msra.mxu0 %v346_v1  ;;  %1509 = vmatpush3.bf16.msra.mxu1 %v346_v1  ;;  %v1513_v3 = vld [vmem:[%s1861_s0 + $0x80] sm:$0xff]   ;;  %v1518_v8 = vld [vmem:[%s1861_s0 + $0x18] sm:$0xff]   ;;  %v1522_v12 = vld [vmem:[%s1861_s0 + $0x28] sm:$0xff]  }
   0x4   :  { %1444 = vmatprep.mubr.msk.bf16.mxu0 %vm247_vm1, %v1512_v2  ;;  %1476 = vmatprep.mubr.msk.bf16.mxu1 %vm247_vm1, %v1513_v3  ;;  %v1519_v9 = vld [vmem:[%s1861_s0 + $0x98] sm:$0xff]   ;;  %v1520_v10 = vld [vmem:[%s1861_s0 + $0x20] sm:$0xff]   ;;  %v1523_v13 = vld [vmem:[%s1861_s0 + $0xa8] sm:$0xff]  }
   0x5   :  { %v1521_v11 = vld [vmem:[%s1861_s0 + $0xa0] sm:$0xff]   ;;  %v1524_v14 = vld [vmem:[%s1861_s0 + $0x30] sm:$0xff]   ;;  %v1526_v16 = vld [vmem:[%s1861_s0 + $0x38] sm:$0xff]  }
   0x6   :  { %1445 = vmatmul.mubr.msk.bf16.vlgmr.msra.gmra.mrb[0].mxu0 %vm247_vm1, %v1514_v4  ;;  %1477 = vmatmul.mubr.msk.bf16.vlgmr.msra.gmra.mrb[0].mxu1 %vm247_vm1, %v1515_v5  ;;  %v1525_v15 = vld [vmem:[%s1861_s0 + $0xb0] sm:$0xff]   ;;  %v1527_v17 = vld [vmem:[%s1861_s0 + $0xb8] sm:$0xff]   ;;  %v1528_v18 = vld [vmem:[%s1861_s0 + $0x40] sm:$0xff]  }
   0x7   :  { %1448 = vmatprep.mubr.msk.bf16.mxu0 %vm247_vm1, %v1516_v6  ;;  %1480 = vmatprep.mubr.msk.bf16.mxu1 %vm247_vm1, %v1517_v7  ;;  %v1529_v19 = vld [vmem:[%s1861_s0 + $0xc0] sm:$0xff]   ;;  %v1530_v20 = vld [vmem:[%s1861_s0 + $0x48] sm:$0xff]   ;;  %v1532_v22 = vld [vmem:[%s1861_s0 + $0x50] sm:$0xff]  }
   0x8   :  { %v1531_v21 = vld [vmem:[%s1861_s0 + $0xc8] sm:$0xff]   ;;  %v1533_v23 = vld [vmem:[%s1861_s0 + $0xd0] sm:$0xff]   ;;  %v1534_v24 = vld [vmem:[%s1861_s0 + $0x58] sm:$0xff]  }
   0x9   :  { %v1535_v25 = vld [vmem:[%s1861_s0 + $0xd8] sm:$0xff]   ;;  %v1536_v26 = vld [vmem:[%s1861_s0 + $0x60] sm:$0xff]   ;;  %v1538_v28 = vld [vmem:[%s1861_s0 + $0x68] sm:$0xff]  }
   0xa   :  { %v1537_v27 = vld [vmem:[%s1861_s0 + $0xe0] sm:$0xff]   ;;  %v1539_v29 = vld [vmem:[%s1861_s0 + $0xe8] sm:$0xff]   ;;  %v1540_v30 = vld [vmem:[%s1861_s0 + $0x70] sm:$0xff]  }
   0xb   :  { %v1541_v31 = vld [vmem:[%s1861_s0 + $0xf0] sm:$0xff]   ;;  %v1542_v32 = vld [vmem:[%s1861_s0 + $0x78] sm:$0xff]   ;;  %v1698_v34 = vld [vmem:[%s1862_s2] ss:$0 sm:$0xff] }
   0xc   :  { %v1543_v33 = vld [vmem:[%s1861_s0 + $0xf8] sm:$0xff]  }
   0xe   :  { %1449 = vmatmul.mubr.msk.bf16.gmra.mrb[4].mxu0 %vm247_vm1, %v1518_v8  ;;  %1481 = vmatmul.mubr.msk.bf16.gmra.mrb[4].mxu1 %vm247_vm1, %v1519_v9 }
   0xf   :  { %1452 = vmatprep.mubr.msk.bf16.mxu0 %vm247_vm1, %v1520_v10  ;;  %1484 = vmatprep.mubr.msk.bf16.mxu1 %vm247_vm1, %v1521_v11 }
  0x16   :  { %1453 = vmatmul.mubr.msk.bf16.gmra.mrb[8].mxu0 %vm247_vm1, %v1522_v12  ;;  %1485 = vmatmul.mubr.msk.bf16.gmra.mrb[8].mxu1 %vm247_vm1, %v1523_v13 }
  0x17   :  { %1456 = vmatprep.mubr.msk.bf16.mxu0 %vm247_vm1, %v1524_v14  ;;  %1488 = vmatprep.mubr.msk.bf16.mxu1 %vm247_vm1, %v1525_v15 }
  0x1e   :  { %1457 = vmatmul.mubr.msk.bf16.gmra.mrb[12].mxu0 %vm247_vm1, %v1526_v16  ;;  %1489 = vmatmul.mubr.msk.bf16.gmra.mrb[12].mxu1 %vm247_vm1, %v1527_v17 }
  0x1f   :  { %1460 = vmatprep.mubr.msk.bf16.mxu0 %vm247_vm1, %v1528_v18  ;;  %1492 = vmatprep.mubr.msk.bf16.mxu1 %vm247_vm1, %v1529_v19 }
  0x26   :  { %1461 = vmatmul.mubr.msk.bf16.gmra.mrb[16].mxu0 %vm247_vm1, %v1530_v20  ;;  %1493 = vmatmul.mubr.msk.bf16.gmra.mrb[16].mxu1 %vm247_vm1, %v1531_v21 }
  0x27   :  { %1464 = vmatprep.mubr.msk.bf16.mxu0 %vm247_vm1, %v1532_v22  ;;  %1496 = vmatprep.mubr.msk.bf16.mxu1 %vm247_vm1, %v1533_v23 }
  0x2e   :  { %1465 = vmatmul.mubr.msk.bf16.gmra.mrb[20].mxu0 %vm247_vm1, %v1534_v24  ;;  %1497 = vmatmul.mubr.msk.bf16.gmra.mrb[20].mxu1 %vm247_vm1, %v1535_v25 }
  0x2f   :  { %1468 = vmatprep.mubr.msk.bf16.mxu0 %vm247_vm1, %v1536_v26  ;;  %1500 = vmatprep.mubr.msk.bf16.mxu1 %vm247_vm1, %v1537_v27 }
  0x36   :  { %1469 = vmatmul.mubr.msk.bf16.gmra.mrb[24].mxu0 %vm247_vm1, %v1538_v28  ;;  %1501 = vmatmul.mubr.msk.bf16.gmra.mrb[24].mxu1 %vm247_vm1, %v1539_v29 }
  0x37   :  { %1472 = vmatprep.mubr.msk.bf16.mxu0 %vm247_vm1, %v1540_v30  ;;  %1504 = vmatprep.mubr.msk.bf16.mxu1 %vm247_vm1, %v1541_v31 }
  0x3e   :  { %1473 = vmatmul.mubr.msk.bf16.gmra.mrb[28].mxu0 %vm247_vm1, %v1542_v32  ;;  %1505 = vmatmul.mubr.msk.bf16.gmra.mrb[28].mxu1 %vm247_vm1, %v1543_v33 }
  0xd9   :  { %v1446_v35 = vpop.f32.mrb[0].mxu0  ;;  %v1478_v37 = vpop.f32.mrb[0].mxu1 }
  0xda   :  { %v391_v36 = vadd.f32 %v1446_v35, %v1698_v34  ;;  %v382_v38 = vpop.f32.mrb[1].mxu0  ;;  %v519_v39 = vadd.f32 %v1478_v37, %v1698_v34  ;;  %v510_v41 = vpop.f32.mrb[1].mxu1 }
  0xdb   :  { %v383_v40 = vadd.f32 %v1698_v34, %v382_v38  ;;  %v1447_v42 = vpop.f32.mrb[2].mxu0  ;;  %v511_v43 = vadd.f32 %v1698_v34, %v510_v41  ;;  %v1479_v45 = vpop.f32.mrb[2].mxu1 }
  0xdc   :  { %v394_v44 = vadd.f32 %v1447_v42, %v1698_v34  ;;  %v385_v46 = vpop.f32.mrb[3].mxu0  ;;  %v522_v47 = vadd.f32 %v1479_v45, %v1698_v34  ;;  %v513_v49 = vpop.f32.mrb[3].mxu1  ;;  %v639_v50 = vmax.f32 %v391_v36, 0.0  ;;  %v671_v53 = vmax.f32 %v519_v39, 0.0 }
  0xdd   :  { %v386_v48 = vadd.f32 %v1698_v34, %v385_v46  ;;  %v514_v52 = vadd.f32 %v1698_v34, %v513_v49  ;;  %v637_v54 = vmax.f32 %v383_v40, 0.0  ;;  %v669_v57 = vmax.f32 %v511_v43, 0.0 }
  0xde   :  { %v640_v51 = vmax.f32 %v394_v44, 0.0  ;;  %v672_v55 = vmax.f32 %v522_v47, 0.0 }
  0xdf   :  { %v638_v56 = vmax.f32 %v386_v48, 0.0  ;;  %v670_v59 = vmax.f32 %v514_v52, 0.0 }
  0xe0   :  { %v1226_v58 = vpack.c.bf16 %v640_v51, %v639_v50  ;;  %v1306_v60 = vpack.c.bf16 %v672_v55, %v671_v53 }
  0xe1   :  { %v1221_v61 = vpack.c.bf16 %v638_v56, %v637_v54  ;;  %v1450_v62 = vpop.f32.mrb[4].mxu0  ;;  %v1301_v63 = vpack.c.bf16 %v670_v59, %v669_v57  ;;  %v1482_v1 = vpop.f32.mrb[4].mxu1 }
  0xe2   :  { %1378 = vst [vmem:[%s1863_s3 + $0x8] sm:$0xff] %v1226_v58   ;;  %v407_v0 = vadd.f32 %v1450_v62, %v1698_v34  ;;  %v398_v2 = vpop.f32.mrb[5].mxu0  ;;  %1394 = vst [vmem:[%s1863_s3 + $0x88] sm:$0xff] %v1306_v60   ;;  %v535_v3 = vadd.f32 %v1482_v1, %v1698_v34  ;;  %v526_v5 = vpop.f32.mrb[5].mxu1 }
  0xe3   :  { %1222 = vst [vmem:[%s1863_s3] sm:$0xff] %v1221_v61   ;;  %v399_v4 = vadd.f32 %v1698_v34, %v398_v2  ;;  %v1451_v6 = vpop.f32.mrb[6].mxu0  ;;  %1393 = vst [vmem:[%s1863_s3 + $0x80] sm:$0xff] %v1301_v63   ;;  %v527_v7 = vadd.f32 %v1698_v34, %v526_v5  ;;  %v1483_v9 = vpop.f32.mrb[6].mxu1 }
  0xe4   :  { %v410_v8 = vadd.f32 %v1451_v6, %v1698_v34  ;;  %v401_v10 = vpop.f32.mrb[7].mxu0  ;;  %v538_v11 = vadd.f32 %v1483_v9, %v1698_v34  ;;  %v529_v13 = vpop.f32.mrb[7].mxu1  ;;  %v643_v14 = vmax.f32 %v407_v0, 0.0  ;;  %v675_v17 = vmax.f32 %v535_v3, 0.0 }
  0xe5   :  { %v402_v12 = vadd.f32 %v1698_v34, %v401_v10  ;;  %v530_v16 = vadd.f32 %v1698_v34, %v529_v13  ;;  %v641_v18 = vmax.f32 %v399_v4, 0.0  ;;  %v673_v21 = vmax.f32 %v527_v7, 0.0 }
  0xe6   :  { %v644_v15 = vmax.f32 %v410_v8, 0.0  ;;  %v676_v19 = vmax.f32 %v538_v11, 0.0 }
  0xe7   :  { %v642_v20 = vmax.f32 %v402_v12, 0.0  ;;  %v674_v23 = vmax.f32 %v530_v16, 0.0 }
  0xe8   :  { %v1236_v22 = vpack.c.bf16 %v644_v15, %v643_v14  ;;  %v1316_v24 = vpack.c.bf16 %v676_v19, %v675_v17 }
  0xe9   :  { %v1231_v25 = vpack.c.bf16 %v642_v20, %v641_v18  ;;  %v1454_v26 = vpop.f32.mrb[8].mxu0  ;;  %v1311_v27 = vpack.c.bf16 %v674_v23, %v673_v21  ;;  %v1486_v29 = vpop.f32.mrb[8].mxu1 }
  0xea   :  { %1380 = vst [vmem:[%s1863_s3 + $0x18] sm:$0xff] %v1236_v22   ;;  %v423_v28 = vadd.f32 %v1454_v26, %v1698_v34  ;;  %v414_v30 = vpop.f32.mrb[9].mxu0  ;;  %1396 = vst [vmem:[%s1863_s3 + $0x98] sm:$0xff] %v1316_v24   ;;  %v551_v31 = vadd.f32 %v1486_v29, %v1698_v34  ;;  %v542_v33 = vpop.f32.mrb[9].mxu1 }
  0xeb   :  { %1379 = vst [vmem:[%s1863_s3 + $0x10] sm:$0xff] %v1231_v25   ;;  %v415_v32 = vadd.f32 %v1698_v34, %v414_v30  ;;  %v1455_v35 = vpop.f32.mrb[10].mxu0  ;;  %1395 = vst [vmem:[%s1863_s3 + $0x90] sm:$0xff] %v1311_v27   ;;  %v543_v36 = vadd.f32 %v1698_v34, %v542_v33  ;;  %v1487_v38 = vpop.f32.mrb[10].mxu1 }
  0xec   :  { %v426_v37 = vadd.f32 %v1455_v35, %v1698_v34  ;;  %v417_v39 = vpop.f32.mrb[11].mxu0  ;;  %v554_v40 = vadd.f32 %v1487_v38, %v1698_v34  ;;  %v545_v42 = vpop.f32.mrb[11].mxu1  ;;  %v647_v43 = vmax.f32 %v423_v28, 0.0  ;;  %v679_v46 = vmax.f32 %v551_v31, 0.0 }
  0xed   :  { %v418_v41 = vadd.f32 %v1698_v34, %v417_v39  ;;  %v546_v45 = vadd.f32 %v1698_v34, %v545_v42  ;;  %v645_v47 = vmax.f32 %v415_v32, 0.0  ;;  %v677_v50 = vmax.f32 %v543_v36, 0.0 }
  0xee   :  { %v648_v44 = vmax.f32 %v426_v37, 0.0  ;;  %v680_v48 = vmax.f32 %v554_v40, 0.0 }
  0xef   :  { %v646_v49 = vmax.f32 %v418_v41, 0.0  ;;  %v678_v52 = vmax.f32 %v546_v45, 0.0 }
  0xf0   :  { %v1246_v51 = vpack.c.bf16 %v648_v44, %v647_v43  ;;  %v1326_v53 = vpack.c.bf16 %v680_v48, %v679_v46 }
  0xf1   :  { %v1241_v54 = vpack.c.bf16 %v646_v49, %v645_v47  ;;  %v1458_v55 = vpop.f32.mrb[12].mxu0  ;;  %v1321_v56 = vpack.c.bf16 %v678_v52, %v677_v50  ;;  %v1490_v58 = vpop.f32.mrb[12].mxu1 }
  0xf2   :  { %1382 = vst [vmem:[%s1863_s3 + $0x28] sm:$0xff] %v1246_v51   ;;  %v439_v57 = vadd.f32 %v1458_v55, %v1698_v34  ;;  %v430_v59 = vpop.f32.mrb[13].mxu0  ;;  %1398 = vst [vmem:[%s1863_s3 + $0xa8] sm:$0xff] %v1326_v53   ;;  %v567_v60 = vadd.f32 %v1490_v58, %v1698_v34  ;;  %v558_v62 = vpop.f32.mrb[13].mxu1 }
  0xf3   :  { %1381 = vst [vmem:[%s1863_s3 + $0x20] sm:$0xff] %v1241_v54   ;;  %v431_v61 = vadd.f32 %v1698_v34, %v430_v59  ;;  %v1459_v63 = vpop.f32.mrb[14].mxu0  ;;  %1397 = vst [vmem:[%s1863_s3 + $0xa0] sm:$0xff] %v1321_v56   ;;  %v559_v0 = vadd.f32 %v1698_v34, %v558_v62  ;;  %v1491_v2 = vpop.f32.mrb[14].mxu1 }
  0xf4   :  { %v442_v1 = vadd.f32 %v1459_v63, %v1698_v34  ;;  %v433_v3 = vpop.f32.mrb[15].mxu0  ;;  %v570_v4 = vadd.f32 %v1491_v2, %v1698_v34  ;;  %v561_v6 = vpop.f32.mrb[15].mxu1  ;;  %v651_v7 = vmax.f32 %v439_v57, 0.0  ;;  %v683_v10 = vmax.f32 %v567_v60, 0.0 }
  0xf5   :  { %v434_v5 = vadd.f32 %v1698_v34, %v433_v3  ;;  %v562_v9 = vadd.f32 %v1698_v34, %v561_v6  ;;  %v649_v11 = vmax.f32 %v431_v61, 0.0  ;;  %v681_v14 = vmax.f32 %v559_v0, 0.0 }
  0xf6   :  { %v652_v8 = vmax.f32 %v442_v1, 0.0  ;;  %v684_v12 = vmax.f32 %v570_v4, 0.0 }
  0xf7   :  { %v650_v13 = vmax.f32 %v434_v5, 0.0  ;;  %v682_v16 = vmax.f32 %v562_v9, 0.0 }
  0xf8   :  { %v1256_v15 = vpack.c.bf16 %v652_v8, %v651_v7  ;;  %v1336_v17 = vpack.c.bf16 %v684_v12, %v683_v10 }
  0xf9   :  { %v1251_v18 = vpack.c.bf16 %v650_v13, %v649_v11  ;;  %v1462_v19 = vpop.f32.mrb[16].mxu0  ;;  %v1331_v20 = vpack.c.bf16 %v682_v16, %v681_v14  ;;  %v1494_v22 = vpop.f32.mrb[16].mxu1 }
  0xfa   :  { %1384 = vst [vmem:[%s1863_s3 + $0x38] sm:$0xff] %v1256_v15   ;;  %v455_v21 = vadd.f32 %v1462_v19, %v1698_v34  ;;  %v446_v23 = vpop.f32.mrb[17].mxu0  ;;  %1400 = vst [vmem:[%s1863_s3 + $0xb8] sm:$0xff] %v1336_v17   ;;  %v583_v24 = vadd.f32 %v1494_v22, %v1698_v34  ;;  %v574_v26 = vpop.f32.mrb[17].mxu1 }
  0xfb   :  { %1383 = vst [vmem:[%s1863_s3 + $0x30] sm:$0xff] %v1251_v18   ;;  %v447_v25 = vadd.f32 %v1698_v34, %v446_v23  ;;  %v1463_v27 = vpop.f32.mrb[18].mxu0  ;;  %1399 = vst [vmem:[%s1863_s3 + $0xb0] sm:$0xff] %v1331_v20   ;;  %v575_v28 = vadd.f32 %v1698_v34, %v574_v26  ;;  %v1495_v30 = vpop.f32.mrb[18].mxu1 }
  0xfc   :  { %v458_v29 = vadd.f32 %v1463_v27, %v1698_v34  ;;  %v449_v31 = vpop.f32.mrb[19].mxu0  ;;  %v586_v32 = vadd.f32 %v1495_v30, %v1698_v34  ;;  %v577_v35 = vpop.f32.mrb[19].mxu1  ;;  %v655_v36 = vmax.f32 %v455_v21, 0.0  ;;  %v687_v39 = vmax.f32 %v583_v24, 0.0 }
  0xfd   :  { %v450_v33 = vadd.f32 %v1698_v34, %v449_v31  ;;  %v578_v38 = vadd.f32 %v1698_v34, %v577_v35  ;;  %v653_v40 = vmax.f32 %v447_v25, 0.0  ;;  %v685_v43 = vmax.f32 %v575_v28, 0.0 }
  0xfe   :  { %v656_v37 = vmax.f32 %v458_v29, 0.0  ;;  %v688_v41 = vmax.f32 %v586_v32, 0.0 }
  0xff   :  { %v654_v42 = vmax.f32 %v450_v33, 0.0  ;;  %v686_v45 = vmax.f32 %v578_v38, 0.0 }
 0x100   :  { %v1266_v44 = vpack.c.bf16 %v656_v37, %v655_v36  ;;  %v1346_v46 = vpack.c.bf16 %v688_v41, %v687_v39 }
 0x101   :  { %v1261_v47 = vpack.c.bf16 %v654_v42, %v653_v40  ;;  %v1466_v48 = vpop.f32.mrb[20].mxu0  ;;  %v1341_v49 = vpack.c.bf16 %v686_v45, %v685_v43  ;;  %v1498_v51 = vpop.f32.mrb[20].mxu1 }
 0x102   :  { %1386 = vst [vmem:[%s1863_s3 + $0x48] sm:$0xff] %v1266_v44   ;;  %v471_v50 = vadd.f32 %v1466_v48, %v1698_v34  ;;  %v462_v52 = vpop.f32.mrb[21].mxu0  ;;  %1402 = vst [vmem:[%s1863_s3 + $0xc8] sm:$0xff] %v1346_v46   ;;  %v599_v53 = vadd.f32 %v1498_v51, %v1698_v34  ;;  %v590_v55 = vpop.f32.mrb[21].mxu1 }
 0x103   :  { %1385 = vst [vmem:[%s1863_s3 + $0x40] sm:$0xff] %v1261_v47   ;;  %v463_v54 = vadd.f32 %v1698_v34, %v462_v52  ;;  %v1467_v56 = vpop.f32.mrb[22].mxu0  ;;  %1401 = vst [vmem:[%s1863_s3 + $0xc0] sm:$0xff] %v1341_v49   ;;  %v591_v57 = vadd.f32 %v1698_v34, %v590_v55  ;;  %v1499_v59 = vpop.f32.mrb[22].mxu1 }
 0x104   :  { %v474_v58 = vadd.f32 %v1467_v56, %v1698_v34  ;;  %v465_v60 = vpop.f32.mrb[23].mxu0  ;;  %v602_v61 = vadd.f32 %v1499_v59, %v1698_v34  ;;  %v593_v63 = vpop.f32.mrb[23].mxu1  ;;  %v659_v0 = vmax.f32 %v471_v50, 0.0  ;;  %v691_v3 = vmax.f32 %v599_v53, 0.0 }
 0x105   :  { %v466_v62 = vadd.f32 %v1698_v34, %v465_v60  ;;  %v594_v2 = vadd.f32 %v1698_v34, %v593_v63  ;;  %v657_v4 = vmax.f32 %v463_v54, 0.0  ;;  %v689_v7 = vmax.f32 %v591_v57, 0.0 }
 0x106   :  { %v660_v1 = vmax.f32 %v474_v58, 0.0  ;;  %v692_v5 = vmax.f32 %v602_v61, 0.0 }
 0x107   :  { %v658_v6 = vmax.f32 %v466_v62, 0.0  ;;  %v690_v9 = vmax.f32 %v594_v2, 0.0 }
 0x108   :  { %v1276_v8 = vpack.c.bf16 %v660_v1, %v659_v0  ;;  %v1356_v10 = vpack.c.bf16 %v692_v5, %v691_v3 }
 0x109   :  { %v1271_v11 = vpack.c.bf16 %v658_v6, %v657_v4  ;;  %v1470_v12 = vpop.f32.mrb[24].mxu0  ;;  %v1351_v13 = vpack.c.bf16 %v690_v9, %v689_v7  ;;  %v1502_v15 = vpop.f32.mrb[24].mxu1 }
 0x10a   :  { %1388 = vst [vmem:[%s1863_s3 + $0x58] sm:$0xff] %v1276_v8   ;;  %v487_v14 = vadd.f32 %v1470_v12, %v1698_v34  ;;  %v478_v16 = vpop.f32.mrb[25].mxu0  ;;  %1404 = vst [vmem:[%s1863_s3 + $0xd8] sm:$0xff] %v1356_v10   ;;  %v615_v17 = vadd.f32 %v1502_v15, %v1698_v34  ;;  %v606_v19 = vpop.f32.mrb[25].mxu1 }
 0x10b   :  { %1387 = vst [vmem:[%s1863_s3 + $0x50] sm:$0xff] %v1271_v11   ;;  %v479_v18 = vadd.f32 %v1698_v34, %v478_v16  ;;  %v1471_v20 = vpop.f32.mrb[26].mxu0  ;;  %1403 = vst [vmem:[%s1863_s3 + $0xd0] sm:$0xff] %v1351_v13   ;;  %v607_v21 = vadd.f32 %v1698_v34, %v606_v19  ;;  %v1503_v23 = vpop.f32.mrb[26].mxu1 }
 0x10c   :  { %v490_v22 = vadd.f32 %v1471_v20, %v1698_v34  ;;  %v481_v24 = vpop.f32.mrb[27].mxu0  ;;  %v618_v25 = vadd.f32 %v1503_v23, %v1698_v34  ;;  %v609_v27 = vpop.f32.mrb[27].mxu1  ;;  %v663_v28 = vmax.f32 %v487_v14, 0.0  ;;  %v695_v31 = vmax.f32 %v615_v17, 0.0 }
 0x10d   :  { %v482_v26 = vadd.f32 %v1698_v34, %v481_v24  ;;  %v610_v30 = vadd.f32 %v1698_v34, %v609_v27  ;;  %v661_v32 = vmax.f32 %v479_v18, 0.0  ;;  %v693_v36 = vmax.f32 %v607_v21, 0.0 }
 0x10e   :  { %v664_v29 = vmax.f32 %v490_v22, 0.0  ;;  %v696_v33 = vmax.f32 %v618_v25, 0.0 }
 0x10f   :  { %v662_v35 = vmax.f32 %v482_v26, 0.0  ;;  %v694_v38 = vmax.f32 %v610_v30, 0.0 }
 0x110   :  { %v1286_v37 = vpack.c.bf16 %v664_v29, %v663_v28  ;;  %v1366_v39 = vpack.c.bf16 %v696_v33, %v695_v31 }
 0x111   :  { %v1281_v40 = vpack.c.bf16 %v662_v35, %v661_v32  ;;  %v1474_v41 = vpop.f32.mrb[28].mxu0  ;;  %v1361_v42 = vpack.c.bf16 %v694_v38, %v693_v36  ;;  %v1506_v44 = vpop.f32.mrb[28].mxu1 }
 0x112   :  { %1390 = vst [vmem:[%s1863_s3 + $0x68] sm:$0xff] %v1286_v37   ;;  %v503_v43 = vadd.f32 %v1474_v41, %v1698_v34  ;;  %v494_v45 = vpop.f32.mrb[29].mxu0  ;;  %1406 = vst [vmem:[%s1863_s3 + $0xe8] sm:$0xff] %v1366_v39   ;;  %v631_v46 = vadd.f32 %v1506_v44, %v1698_v34  ;;  %v622_v48 = vpop.f32.mrb[29].mxu1 }
 0x113   :  { %1389 = vst [vmem:[%s1863_s3 + $0x60] sm:$0xff] %v1281_v40   ;;  %v495_v47 = vadd.f32 %v1698_v34, %v494_v45  ;;  %v1475_v49 = vpop.f32.mrb[30].mxu0  ;;  %1405 = vst [vmem:[%s1863_s3 + $0xe0] sm:$0xff] %v1361_v42   ;;  %v623_v50 = vadd.f32 %v1698_v34, %v622_v48  ;;  %v1507_v52 = vpop.f32.mrb[30].mxu1 }
 0x114   :  { %v506_v51 = vadd.f32 %v1475_v49, %v1698_v34  ;;  %v497_v53 = vpop.f32.mrb[31].mxu0  ;;  %v634_v54 = vadd.f32 %v1507_v52, %v1698_v34  ;;  %v625_v56 = vpop.f32.mrb[31].mxu1  ;;  %v667_v57 = vmax.f32 %v503_v43, 0.0  ;;  %v699_v60 = vmax.f32 %v631_v46, 0.0 }
 0x115   :  { %v498_v55 = vadd.f32 %v1698_v34, %v497_v53  ;;  %v626_v59 = vadd.f32 %v1698_v34, %v625_v56  ;;  %v665_v61 = vmax.f32 %v495_v47, 0.0  ;;  %v697_v0 = vmax.f32 %v623_v50, 0.0 }
 0x116   :  { %v668_v58 = vmax.f32 %v506_v51, 0.0  ;;  %v700_v62 = vmax.f32 %v634_v54, 0.0 }
 0x117   :  { %v666_v63 = vmax.f32 %v498_v55, 0.0  ;;  %v698_v2 = vmax.f32 %v626_v59, 0.0 }
 0x118   :  { %v1296_v1 = vpack.c.bf16 %v668_v58, %v667_v57  ;;  %v1376_v3 = vpack.c.bf16 %v700_v62, %v699_v60 }
 0x119   :  { %v1291_v4 = vpack.c.bf16 %v666_v63, %v665_v61  ;;  %v1371_v5 = vpack.c.bf16 %v698_v2, %v697_v0 }
 0x11a   :  { %1392 = vst [vmem:[%s1863_s3 + $0x78] sm:$0xff] %v1296_v1   ;;  %1408 = vst [vmem:[%s1863_s3 + $0xf8] sm:$0xff] %v1376_v3  }
 0x11b   :  { %1391 = vst [vmem:[%s1863_s3 + $0x70] sm:$0xff] %v1291_v4   ;;  %1407 = vst [vmem:[%s1863_s3 + $0xf0] sm:$0xff] %v1371_v5  }

// kernel: block_forward.3
= control target key start
LH: loop header
LB: loop body
LE: loop exit
PB: predicated region body
PF: predicated region fallthrough
CT: control target
= control target key end

     0   :  { %s3540_s27 = smov 0   ;;  %s3969_s0 = inlined_call_operand.vmem [shape: bf16[8,9,9,128], index: 0, kind: input, shape index: {}]   ;;  %s3970_s1 = inlined_call_operand.vmem [shape: bf16[9,128,128], index: 1, kind: input, shape index: {}]   ;;  %s3971_s2 = inlined_call_operand.vmem [shape: f32[1,128], index: 2, kind: input, shape index: {}]   ;;  %s3972_s3 = inlined_call_operand.vmem [shape: bf16[128,128], index: 3, kind: input, shape index: {}]   ;;  %s3973_s4 = inlined_call_operand.vmem [shape: f32[1,128], index: 4, kind: input, shape index: {}]   ;;  %s3974_s5 = inlined_call_operand.vmem [shape: bf16[2,64,4], index: 5, kind: input, shape index: {}]   ;;  %s3975_s6 = inlined_call_operand.vmem [shape: bf16[4,128], index: 6, kind: input, shape index: {}]   ;;  %s3976_s7 = inlined_call_operand.vmem [shape: f32[1,128], index: 7, kind: input, shape index: {}]   ;;  %s3977_s8 = inlined_call_operand.vmem [shape: f32[2,64,128], index: 8, kind: output, shape index: {}]  }
   0x1 LB: > { %s3546_s28 = sadd.s32 4294967295, %s3493_s27   ;;  %p2573_p0 = scmp.ge.s32.totalorder %s3493_s27, 1  ;;  %s3493_s27 = sphi %s3540_s27, %s18_s27  }
   0x2   : > { %p274_p1 = scmp.lt.s32.totalorder %s3493_s27, 3 }
   0x4   : > { %p275_p2 = pnand %p2573_p0, %p274_p1 }
   0x5   : > { %v3379_v0 = vld [vmem:[%s3970_s1 + $0x40] sm:$0xff] (!%p275_p2)   ;;  %s2574_s9 = sshll.u32 (!%p275_p2), %s3546_s28, 2  ;;  %v3381_v2 = vld [vmem:[%s3970_s1 + $0x48] sm:$0xff] (!%p275_p2)   ;;  %v3383_v4 = vld [vmem:[%s3970_s1 + $0x50] sm:$0xff] (!%p275_p2)   ;;  %vm672_vm0 = vsmask.f32 (!%p275_p2), 3328 }
   0x6   : > { %278 = sbr.rel (%p275_p2) target bundleno = 633 (0x279), region = 52  ;;  %v3380_v1 = vld [vmem:[%s3970_s1 + $0x100] sm:$0xff] (!%p275_p2)   ;;  %p315_p3 = scmp.lt.s32.totalorder (!%p275_p2), %s2574_s9, 7  ;;  %3036 = vmatprep.subr.bf16.mxu1 (!%p275_p2), %v3379_v0  ;;  %v3382_v3 = vld [vmem:[%s3970_s1 + $0x108] sm:$0xff] (!%p275_p2)   ;;  %v3384_v5 = vld [vmem:[%s3970_s1 + $0x110] sm:$0xff] (!%p275_p2)   ;;  %vm2394_vm3 = vcmask (!%p275_p2), 1041408  }
   0x7   : > { %3132 = vmatprep.subr.bf16.mxu0 (!%p275_p2), %v3380_v1  ;;  %3037 = vmatpush3.bf16.msra.mxu1 (!%p275_p2), %v3379_v0  ;;  %v3385_v6 = vld [vmem:[%s3970_s1 + $0x58] sm:$0xff] (!%p275_p2)   ;;  %v3387_v8 = vld [vmem:[%s3970_s1 + $0x60] sm:$0xff] (!%p275_p2)   ;;  %v3389_v10 = vld [vmem:[%s3970_s1 + $0x68] sm:$0xff] (!%p275_p2)   ;;  %vm673_vm1 = vsmask.f32 (!%p275_p2), 7440  ;;  %p321_p4 = scmp.lt.s32.totalorder (!%p275_p2), %s3546_s28, 1 }
   0x8   : > { %3133 = vmatpush3.bf16.msra.mxu0 (!%p275_p2), %v3380_v1  ;;  %3038 = vmatprep.subr.bf16.mxu1 (!%p275_p2), %v3381_v2  ;;  %v3386_v7 = vld [vmem:[%s3970_s1 + $0x118] sm:$0xff] (!%p275_p2)   ;;  %v3388_v9 = vld [vmem:[%s3970_s1 + $0x120] sm:$0xff] (!%p275_p2)   ;;  %v3390_v12 = vld [vmem:[%s3970_s1 + $0x128] sm:$0xff] (!%p275_p2)   ;;  %vm2381_vm4 = vcmask (!%p275_p2), 31744  }
   0x9   : > { %3134 = vmatprep.subr.bf16.mxu0 (!%p275_p2), %v3382_v3  ;;  %v3391_v14 = vld [vmem:[%s3970_s1 + $0x70] sm:$0xff] (!%p275_p2)   ;;  %v3393_v16 = vld [vmem:[%s3970_s1 + $0x78] sm:$0xff] (!%p275_p2)   ;;  %v3396_v18 = vld [vmem:[%s3970_s1] sm:$0xff] (!%p275_p2)  }
   0xa   : > { %v3392_v15 = vld [vmem:[%s3970_s1 + $0x130] sm:$0xff] (!%p275_p2)   ;;  %v3394_v17 = vld [vmem:[%s3970_s1 + $0x138] sm:$0xff] (!%p275_p2)   ;;  %v3398_v19 = vld [vmem:[%s3970_s1 + $0x140] sm:$0xff] (!%p275_p2)  }
   0xb   : > { %3039 = vmatpush3.bf16.msra.mxu1 (!%p275_p2), %v3381_v2  ;;  %v3401_v22 = vld [vmem:[%s3970_s1 + $0x8] sm:$0xff] (!%p275_p2)   ;;  %v3403_v26 = vld [vmem:[%s3970_s1 + $0x10] sm:$0xff] (!%p275_p2)   ;;  %v3405_v28 = vld [vmem:[%s3970_s1 + $0x18] sm:$0xff] (!%p275_p2)  }
   0xc   : > { %3135 = vmatpush3.bf16.msra.mxu0 (!%p275_p2), %v3382_v3  ;;  %3040 = vmatprep.subr.bf16.mxu1 (!%p275_p2), %v3383_v4  ;;  %v3402_v23 = vld [vmem:[%s3970_s1 + $0x148] sm:$0xff] (!%p275_p2)   ;;  %v3404_v27 = vld [vmem:[%s3970_s1 + $0x150] sm:$0xff] (!%p275_p2)   ;;  %v3406_v31 = vld [vmem:[%s3970_s1 + $0x158] sm:$0xff] (!%p275_p2)  }
   0xd   : > { %s3981_s9 = smov (!%p315_p3, %s2574_s9), 7  ;;  %3136 = vmatprep.subr.bf16.mxu0 %v3384_v5  ;;  %v3407_v38 = vld [vmem:[%s3970_s1 + $0x20] sm:$0xff]   ;;  %v3409_v47 = vld [vmem:[%s3970_s1 + $0x28] sm:$0xff]   ;;  %vm3655_vm2 = vmor %vm672_vm0, %vm673_vm1  ;;  %s3983_s28 = smov (!%p321_p4, %s3546_s28), 1 }
   0xe   : > { %s3370_s24 = smul.u32 72, %s3981_s9  ;;  %v3408_v43 = vld [vmem:[%s3970_s1 + $0x160] sm:$0xff]   ;;  %v3410_v50 = vld [vmem:[%s3970_s1 + $0x168] sm:$0xff]   ;;  %v3412_v2 = vld [vmem:[%s3970_s1 + $0x30] sm:$0xff]   ;;  %s2909_s20 = sshll.u32 %s3983_s28, 5 }
   0xf   : > { %3041 = vmatpush3.bf16.msra.mxu1 %v3383_v4  ;;  %v3478_v53 = vld [vmem:[%s3972_s3 + $0x18] sm:$0xff]   ;;  %s3933_s22 = scalar_lea.vmem %s3974_s5, %s2909_s20  ;;  %s2910_s10 = sshll.u32 %s3983_s28, 6 }
  0x10   : > { %3137 = vmatpush3.bf16.msra.mxu0 %v3384_v5  ;;  %3042 = vmatprep.subr.bf16.mxu1 %v3385_v6  ;;  %s3584_s12 = scalar_lea.vmem %s3969_s0, %s3370_s24  ;;  %s3956_s13 = scalar_lea.vmem %s3977_s8, %s2910_s10 }
  0x11   : > { %3138 = vmatprep.subr.bf16.mxu0 %v3386_v7  ;;  %v3395_v11 = vld [vmem:[%s3584_s12 + $0x48] ss:$8 sps:$4 sm:$0xff]   ;;  %v3397_v13 = vld [vmem:[%s3584_s12 + $0xd8] ss:$8 sps:$4 sm:$0xff]   ;;  %v2729_v34 = vld [vmem:[%s3584_s12 + $0x94] sm:$0x1] }
  0x12   : > { %3052 = vmatprep.mubr.bf16.mxu1 %v3395_v11  ;;  %3148 = vmatprep.mubr.bf16.mxu0 %v3397_v13  ;;  %v3399_v20 = vld [vmem:[%s3584_s12 + $0x58] ss:$8 sps:$4 sm:$0xff]   ;;  %v3400_v21 = vld [vmem:[%s3584_s12 + $0xe8] ss:$8 sps:$4 sm:$0xff]   ;;  %v2731_v39 = vld [vmem:[%s3584_s12 + $0x9c] sm:$0x1] }
  0x13   : > { %3043 = vmatpush3.bf16.msra.mxu1 %v3385_v6  ;;  %v3411_v24 = vld [vmem:[%s3584_s12 + $0x68] ss:$8 sps:$4 sm:$0xff]   ;;  %v3413_v25 = vld [vmem:[%s3584_s12 + $0xf8] ss:$8 sps:$4 sm:$0xff]   ;;  %v1309_v40 = vshll.u32 %v2729_v34, 16  ;;  %v1323_v46 = vshll.u32 %v2731_v39, 16 }
  0x14   : > { %3139 = vmatpush3.bf16.msra.mxu0 %v3386_v7  ;;  %3044 = vmatprep.subr.bf16.mxu1 %v3387_v8  ;;  %v3415_v29 = vld [vmem:[%s3584_s12 + $0x78] ss:$8 sps:$4 sm:$0xff]   ;;  %v3416_v30 = vld [vmem:[%s3584_s12 + $0x108] ss:$8 sps:$4 sm:$0xff]   ;;  %v2733_v57 = vld [vmem:[%s3584_s12 + $0xa4] sm:$0x1] }
  0x15   : > { %3140 = vmatprep.subr.bf16.mxu0 %v3388_v9  ;;  %v3419_v32 = vld [vmem:[%s3584_s12] ss:$8 sps:$4 sm:$0xff]   ;;  %v2728_v33 = vld [vmem:[%s3584_s12 + $0x90] sm:$0xf]  ;;  %v2730_v35 = vld [vmem:[%s3584_s12 + $0x98] sm:$0xf] }
  0x16   : > { %v1300_v36 = vshrl.u32 %v2728_v33, 16  ;;  %v1303_v37 = vshll.u32 %v2728_v33, 16  ;;  %v1314_v41 = vshrl.u32 %v2730_v35, 16  ;;  %v1317_v42 = vshll.u32 %v2730_v35, 16  ;;  %v2732_v56 = vld [vmem:[%s3584_s12 + $0xa0] sm:$0xf] }
  0x17   : > { %3045 = vmatpush3.bf16.msra.mxu1 %v3387_v8  ;;  %v1311_v52 = vrot.slane %v1309_v40, 5  ;;  %v1325_v55 = vrot.slane %v1323_v46, 5  ;;  %v2734_v59 = vld [vmem:[%s3584_s12 + $0xa8] sm:$0xf]  ;;  %v2735_v60 = vld [vmem:[%s3584_s12 + $0xac] sm:$0x1] }
  0x18   : > { %3141 = vmatpush3.bf16.msra.mxu0 %v3388_v9  ;;  %3046 = vmatprep.subr.bf16.mxu1 %v3389_v10  ;;  %v1302_v44 = vrot.slane %v1300_v36, 4  ;;  %v1305_v45 = vrot.slane %v1303_v37, 5  ;;  %v1316_v48 = vrot.slane %v1314_v41, 4  ;;  %v1319_v49 = vrot.slane %v1317_v42, 5  ;;  %v3414_v6 = vld [vmem:[%s3970_s1 + $0x170] sm:$0xff]  }
  0x19   : > { %3142 = vmatprep.subr.bf16.mxu0 %v3390_v12  ;;  %v1328_v61 = vshrl.u32 %v2732_v56, 16  ;;  %v1331_v63 = vshll.u32 %v2732_v56, 16  ;;  %v1337_v0 = vshll.u32 %v2733_v57, 16  ;;  %v1342_v1 = vshrl.u32 %v2734_v59, 16  ;;  %v3433_v37 = vld [vmem:[%s3584_s12 + $0x20] ss:$8 sps:$4 sm:$0xff]  }
  0x1a   : > { %v1306_v51 = vor.u32 %v1305_v45, %v1302_v44  ;;  %v1320_v54 = vor.u32 %v1319_v49, %v1316_v48  ;;  %v1345_v5 = vshll.u32 %v2734_v59, 16  ;;  %v3436_v48 = vld [vmem:[%s3584_s12 + $0x30] ss:$8 sps:$4 sm:$0xff]   ;;  %v2740_v49 = vld [vmem:[%s3584_s12 + $0xc0] sm:$0xf] }
  0x1b   : > { %3047 = vmatpush3.bf16.msra.mxu1 %v3389_v10  ;;  %v1330_v4 = vrot.slane %v1328_v61, 4  ;;  %v1333_v8 = vrot.slane %v1331_v63, 5  ;;  %v1344_v9 = vrot.slane %v1342_v1, 4  ;;  %v1351_v10 = vshll.u32 %v2735_v60, 16  ;;  %v3427_v59 = vld [vmem:[%s3970_s1 + $0x98] sm:$0xff]  }
  0x1c   : > { %3143 = vmatpush3.bf16.msra.mxu0 %v3390_v12  ;;  %3048 = vmatprep.subr.bf16.mxu1 %v3391_v14  ;;  %v1307_v58 = vrot.slane %v1306_v51, 4  ;;  %v1321_v62 = vrot.slane %v1320_v54, 4  ;;  %v1339_v12 = vrot.slane %v1337_v0, 5  ;;  %v1347_v13 = vrot.slane %v1345_v5, 5  ;;  %v2742_v51 = vld [vmem:[%s3584_s12 + $0xc8] sm:$0xf] }
  0x1d   : > { %3144 = vmatprep.subr.bf16.mxu0 %v3392_v15  ;;  %v1384_v56 = vshrl.u32 %v2740_v49, 16  ;;  %v1387_v57 = vshll.u32 %v2740_v49, 16  ;;  %v1398_v61 = vshrl.u32 %v2742_v51, 16 }
  0x1e   : > { %v1312_v3 = vsel %vm3655_vm2, %v1307_v58, %v1311_v52  ;;  %v1326_v7 = vsel %vm3655_vm2, %v1321_v62, %v1325_v55  ;;  %v3426_v52 = vld [vmem:[%s3970_s1 + $0x190] sm:$0xff]   ;;  %v2743_v55 = vld [vmem:[%s3584_s12 + $0xcc] sm:$0x1]  ;;  %v1401_v62 = vshll.u32 %v2742_v51, 16 }
  0x1f   : > { %3049 = vmatpush3.bf16.msra.mxu1 %v3391_v14  ;;  %v2760_v11 = vcombine.low %v1312_v3, %v1326_v7  ;;  %v3417_v14 = vld [vmem:[%s3970_s1 + $0x38] sm:$0xff]   ;;  %v1407_v63 = vshll.u32 %v2743_v55, 16  ;;  %v1386_v1 = vrot.slane %v1384_v56, 4 }
  0x20   : > { %3145 = vmatpush3.bf16.msra.mxu0 %v3392_v15  ;;  %3050 = vmatprep.subr.bf16.mxu1 %v3393_v16  ;;  %v1334_v15 = vor.u32 %v1333_v8, %v1330_v4  ;;  %v3428_v4 = vld [vmem:[%s3970_s1 + $0x198] sm:$0xff]   ;;  %v1403_v7 = vrot.slane %v1401_v62, 5 }
  0x21   : > { %3146 = vmatprep.subr.bf16.mxu0 %v3394_v17  ;;  %v1409_v8 = vrot.slane %v1407_v63, 5 }
  0x23   : > { %3051 = vmatpush3.bf16.msra.mxu1 %v3393_v16  ;;  %v1348_v16 = vor.u32 %v1347_v13, %v1344_v9  ;;  %v3429_v13 = vld [vmem:[%s3970_s1 + $0xa0] sm:$0xff]  }
  0x24   : > { %3147 = vmatpush3.bf16.msra.mxu0 %v3394_v17  ;;  %3060 = vmatprep.subr.bf16.mxu1 %v3396_v18  ;;  %v1335_v17 = vrot.slane %v1334_v15, 4 }
  0x25   : > { %3156 = vmatprep.subr.bf16.mxu0 %v3398_v19 }
  0x26   : > { %3053 = vmatmul.mubr.bf16.vlgmr.msra.gmra.mrb[0].mxu1 %v3399_v20  ;;  %v1349_v20 = vrot.slane %v1348_v16, 4  ;;  %v658_v16 = vld [vmem:[%s3584_s12 + $0x8] sm:$0xf] }
  0x27   : > { %3061 = vmatpush3.bf16.msra.mxu1 %v3396_v18  ;;  %3149 = vmatmul.mubr.bf16.vlgmr.msra.gmra.mrb[0].mxu0 %v3400_v21  ;;  %v1353_v18 = vrot.slane %v1351_v10, 5  ;;  %v3420_v21 = vld [vmem:[%s3970_s1 + $0x80] sm:$0xff]  }
  0x28   : > { %3157 = vmatpush3.bf16.msra.mxu0 %v3398_v19  ;;  %3062 = vmatprep.subr.bf16.mxu1 %v3401_v22  ;;  %v3418_v19 = vld [vmem:[%s3970_s1 + $0x178] sm:$0xff]  }
  0x29   : > { %3158 = vmatprep.subr.bf16.mxu0 %v3402_v23  ;;  %3056 = vmatprep.mubr.bf16.mxu1 %v3411_v24  ;;  %v3421_v24 = vld [vmem:[%s3970_s1 + $0x180] sm:$0xff]  }
  0x2a   : > { %3152 = vmatprep.mubr.bf16.mxu0 %v3413_v25  ;;  %v3422_v25 = vld [vmem:[%s3584_s12 + $0x10] ss:$8 sps:$4 sm:$0xff]  }
  0x2b   : > { %3063 = vmatpush3.bf16.msra.mxu1 %v3401_v22  ;;  %v1340_v22 = vsel %vm3655_vm2, %v1335_v17, %v1339_v12  ;;  %v657_v12 = vld [vmem:[%s3584_s12 + $0x4] sm:$0x1]  ;;  %v659_v17 = vld [vmem:[%s3584_s12 + $0xc] sm:$0x1] }
  0x2c   : > { %3159 = vmatpush3.bf16.msra.mxu0 %v3402_v23  ;;  %3064 = vmatprep.subr.bf16.mxu1 %v3403_v26  ;;  %v1354_v23 = vsel %vm3655_vm2, %v1349_v20, %v1353_v18 }
  0x2d   : > { %3160 = vmatprep.subr.bf16.mxu0 %v3404_v27 }
  0x2e   : > { %3057 = vmatmul.mubr.bf16.gmra.mrb[4].mxu1 %v3415_v29  ;;  %v3424_v29 = vld [vmem:[%s3970_s1 + $0x188] sm:$0xff]  }
  0x2f   : > { %3065 = vmatpush3.bf16.msra.mxu1 %v3403_v26  ;;  %3153 = vmatmul.mubr.bf16.gmra.mrb[4].mxu0 %v3416_v30  ;;  %v3423_v26 = vld [vmem:[%s3970_s1 + $0x88] sm:$0xff]   ;;  %v2737_v30 = vld [vmem:[%s3584_s12 + $0xb4] sm:$0x1] }
  0x30   : > { %3161 = vmatpush3.bf16.msra.mxu0 %v3404_v27  ;;  %3066 = vmatprep.subr.bf16.mxu1 %v3405_v28  ;;  %v2736_v27 = vld [vmem:[%s3584_s12 + $0xb0] sm:$0xf]  ;;  %v1365_v35 = vshll.u32 %v2737_v30, 16 }
  0x31   : > { %3162 = vmatprep.subr.bf16.mxu0 %v3406_v31  ;;  %3076 = vmatprep.mubr.bf16.mxu1 %v3419_v32  ;;  %v2739_v32 = vld [vmem:[%s3584_s12 + $0xbc] sm:$0x1]  ;;  %v1356_v33 = vshrl.u32 %v2736_v27, 16  ;;  %v1359_v34 = vshll.u32 %v2736_v27, 16  ;;  %v699_v27 = vshll.u32 %v659_v17, 16 }
  0x32   : > { %3172 = vmatprep.mubr.bf16.mxu0 %v2760_v11  ;;  %v1379_v39 = vshll.u32 %v2739_v32, 16  ;;  %v1367_v44 = vrot.slane %v1365_v35, 5  ;;  %v656_v11 = vld [vmem:[%s3584_s12] sm:$0xf]  ;;  %v3431_v32 = vld [vmem:[%s3970_s1 + $0xa8] sm:$0xff]  }
  0x33   : > { %3067 = vmatpush3.bf16.msra.mxu1 %v3405_v28  ;;  %v2761_v28 = vcombine.low %v1340_v22, %v1354_v23  ;;  %v1358_v40 = vrot.slane %v1356_v33, 4  ;;  %v1361_v41 = vrot.slane %v1359_v34, 5  ;;  %v676_v18 = vshrl.u32 %v656_v11, 16  ;;  %v667_v17 = vld [vmem:[%s3584_s12 + $0x2c] sm:$0x1] }
  0x34   : > { %3163 = vmatpush3.bf16.msra.mxu0 %v3406_v31  ;;  %3068 = vmatprep.subr.bf16.mxu1 %v3407_v38  ;;  %v2738_v31 = vld [vmem:[%s3584_s12 + $0xb8] sm:$0xf]  ;;  %v1381_v46 = vrot.slane %v1379_v39, 5  ;;  %v690_v22 = vshrl.u32 %v658_v16, 16  ;;  %v693_v23 = vshll.u32 %v658_v16, 16 }
  0x35   : > { %3164 = vmatprep.subr.bf16.mxu0 %v3408_v43  ;;  %v1370_v36 = vshrl.u32 %v2738_v31, 16  ;;  %v666_v16 = vld [vmem:[%s3584_s12 + $0x28] sm:$0xf] }
  0x36   : > { %v692_v30 = vrot.slane %v690_v22, 4  ;;  %v746_v22 = vshrl.u32 %v666_v16, 16 }
  0x37   : > { %3069 = vmatpush3.bf16.msra.mxu1 %v3407_v38  ;;  %v1373_v38 = vshll.u32 %v2738_v31, 16  ;;  %v1372_v42 = vrot.slane %v1370_v36, 4  ;;  %v695_v31 = vrot.slane %v693_v23, 5  ;;  %v701_v36 = vrot.slane %v699_v27, 5  ;;  %v668_v23 = vld [vmem:[%s3584_s12 + $0x30] sm:$0xf] }
  0x38   : > { %3165 = vmatpush3.bf16.msra.mxu0 %v3408_v43  ;;  %3070 = vmatprep.subr.bf16.mxu1 %v3409_v47  ;;  %v3425_v43 = vld [vmem:[%s3970_s1 + $0x90] sm:$0xff]   ;;  %v670_v27 = vld [vmem:[%s3584_s12 + $0x38] sm:$0xf] }
  0x39   : > { %3166 = vmatprep.subr.bf16.mxu0 %v3410_v50  ;;  %v1375_v45 = vrot.slane %v1373_v38, 5  ;;  %v3432_v38 = vld [vmem:[%s3970_s1 + $0x1a8] sm:$0xff]  }
  0x3b   : > { %3071 = vmatpush3.bf16.msra.mxu1 %v3409_v47  ;;  %v1362_v47 = vor.u32 %v1361_v41, %v1358_v40  ;;  %v1376_v54 = vor.u32 %v1375_v45, %v1372_v42  ;;  %v696_v40 = vor.u32 %v695_v31, %v692_v30  ;;  %v660_v41 = vld [vmem:[%s3584_s12 + $0x10] sm:$0xf]  ;;  %v748_v31 = vrot.slane %v746_v22, 4  ;;  %v3462_v22 = vld [vmem:[%s3970_s1 + $0x200] sm:$0xff]  }
  0x3c   : > { %3167 = vmatpush3.bf16.msra.mxu0 %v3410_v50  ;;  %3072 = vmatprep.subr.bf16.mxu1 %v3412_v2  ;;  %v2741_v50 = vld [vmem:[%s3584_s12 + $0xc4] sm:$0x1]  ;;  %v704_v45 = vshrl.u32 %v660_v41, 16 }
  0x3d   : > { %3168 = vmatprep.subr.bf16.mxu0 %v3414_v6  ;;  %v1393_v58 = vshll.u32 %v2741_v50, 16  ;;  %v1363_v60 = vrot.slane %v1362_v47, 4  ;;  %v1377_v0 = vrot.slane %v1376_v54, 4  ;;  %v663_v47 = vld [vmem:[%s3584_s12 + $0x1c] sm:$0x1] }
  0x3f   : > { %3073 = vmatpush3.bf16.msra.mxu1 %v3412_v2  ;;  %v1389_v2 = vrot.slane %v1387_v57, 5  ;;  %v1395_v3 = vrot.slane %v1393_v58, 5  ;;  %v1368_v5 = vsel %vm3655_vm2, %v1363_v60, %v1367_v44  ;;  %v1382_v9 = vsel %vm3655_vm2, %v1377_v0, %v1381_v46  ;;  %v662_v44 = vld [vmem:[%s3584_s12 + $0x18] sm:$0xf]  ;;  %v3435_v60 = vld [vmem:[%s3970_s1 + $0x1b0] sm:$0xff]  }
  0x40   : > { %3169 = vmatpush3.bf16.msra.mxu0 %v3414_v6  ;;  %3074 = vmatprep.subr.bf16.mxu1 %v3417_v14  ;;  %v1400_v6 = vrot.slane %v1398_v61, 4  ;;  %v697_v46 = vrot.slane %v696_v40, 4  ;;  %v718_v50 = vshrl.u32 %v662_v44, 16  ;;  %v721_v54 = vshll.u32 %v662_v44, 16 }
  0x41   : > { %3170 = vmatprep.subr.bf16.mxu0 %v3418_v19  ;;  %v1390_v10 = vor.u32 %v1389_v2, %v1386_v1  ;;  %v727_v58 = vshll.u32 %v663_v47, 16  ;;  %v774_v40 = vshrl.u32 %v670_v27, 16 }
  0x42   : > { %v1404_v15 = vor.u32 %v1403_v7, %v1400_v6  ;;  %v702_v55 = vsel %vm3655_vm2, %v697_v46, %v701_v36  ;;  %v720_v57 = vrot.slane %v718_v50, 4  ;;  %v723_v63 = vrot.slane %v721_v54, 5  ;;  %v3438_v6 = vld [vmem:[%s3970_s1 + $0x1b8] sm:$0xff]   ;;  %v3439_v7 = vld [vmem:[%s3970_s1 + $0xc0] sm:$0xff]  }
  0x43   : > { %3075 = vmatpush3.bf16.msra.mxu1 %v3417_v14  ;;  %v2762_v14 = vcombine.low %v1368_v5, %v1382_v9  ;;  %v1391_v20 = vrot.slane %v1390_v10, 4  ;;  %v3441_v10 = vld [vmem:[%s3970_s1 + $0x1c0] sm:$0xff]   ;;  %v763_v36 = vshll.u32 %v668_v23, 16 }
  0x44   : > { %3171 = vmatpush3.bf16.msra.mxu0 %v3418_v19  ;;  %3084 = vmatprep.subr.bf16.mxu1 %v3420_v21  ;;  %v679_v19 = vshll.u32 %v656_v11, 16  ;;  %v724_v1 = vor.u32 %v723_v63, %v720_v57  ;;  %v3442_v11 = vld [vmem:[%s3584_s12 + $0x18] ss:$8 sps:$4 sm:$0xff]  }
  0x45   : > { %3180 = vmatprep.subr.bf16.mxu0 %v3421_v24 }
  0x46   : > { %3077 = vmatmul.mubr.bf16.vlgmr.msra.gmra.mrb[0].mxu1 %v3422_v25  ;;  %v678_v25 = vrot.slane %v676_v18, 4  ;;  %v725_v5 = vrot.slane %v724_v1, 4  ;;  %v3444_v18 = vld [vmem:[%s3970_s1 + $0x1c8] sm:$0xff]   ;;  %v3449_v1 = vld [vmem:[%s3970_s1 + $0xe0] sm:$0xff]  }
  0x47   : > { %3085 = vmatpush3.bf16.msra.mxu1 %v3420_v21  ;;  %3173 = vmatmul.mubr.bf16.vlgmr.msra.gmra.mrb[0].mxu0 %v2761_v28  ;;  %v685_v21 = vshll.u32 %v657_v12, 16  ;;  %v3430_v28 = vld [vmem:[%s3970_s1 + $0x1a0] sm:$0xff]  }
  0x48   : > { %3181 = vmatpush3.bf16.msra.mxu0 %v3421_v24  ;;  %3086 = vmatprep.subr.bf16.mxu1 %v3423_v26  ;;  %v1405_v24 = vrot.slane %v1404_v15, 4  ;;  %v664_v12 = vld [vmem:[%s3584_s12 + $0x20] sm:$0xf]  ;;  %v665_v15 = vld [vmem:[%s3584_s12 + $0x24] sm:$0x1] }
  0x49   : > { %3182 = vmatprep.subr.bf16.mxu0 %v3424_v29  ;;  %3080 = vmatprep.mubr.bf16.mxu1 %v3433_v37  ;;  %v687_v35 = vrot.slane %v685_v21, 5  ;;  %v3440_v37 = vld [vmem:[%s3584_s12 + $0x8] ss:$8 sps:$4 sm:$0xff]   ;;  %v741_v21 = vshll.u32 %v665_v15, 16  ;;  %v2845_v15 = vld [vmem:[%s3584_s12 + $0xc] sm:$0x1] }
  0x4a   : > { %3176 = vmatprep.mubr.bf16.mxu0 %v2762_v14  ;;  %v1410_v33 = vsel %vm3655_vm2, %v1405_v24, %v1409_v8  ;;  %v3443_v14 = vld [vmem:[%s3970_s1 + $0xc8] sm:$0xff]   ;;  %v749_v24 = vshll.u32 %v666_v16, 16  ;;  %v2846_v16 = vld [vmem:[%s3584_s12 + $0x10] sm:$0xf] }
  0x4b   : > { %3087 = vmatpush3.bf16.msra.mxu1 %v3423_v26  ;;  %v681_v26 = vrot.slane %v679_v19, 5  ;;  %v732_v19 = vshrl.u32 %v664_v12, 16  ;;  %v743_v30 = vrot.slane %v741_v21, 5  ;;  %v1941_v21 = vshll.u32 %v2846_v16, 16 }
  0x4c   : > { %3183 = vmatpush3.bf16.msra.mxu0 %v3424_v29  ;;  %3088 = vmatprep.subr.bf16.mxu1 %v3425_v43  ;;  %v1396_v29 = vsel %vm3655_vm2, %v1391_v20, %v1395_v3  ;;  %v729_v3 = vrot.slane %v727_v58, 5  ;;  %v735_v20 = vshll.u32 %v664_v12, 16  ;;  %v3447_v58 = vld [vmem:[%s3970_s1 + $0xd8] sm:$0xff]  }
  0x4d   : > { %3184 = vmatprep.subr.bf16.mxu0 %v3426_v52  ;;  %v682_v34 = vor.u32 %v681_v26, %v678_v25  ;;  %v2763_v39 = vcombine.low %v1396_v29, %v1410_v33  ;;  %v755_v25 = vshll.u32 %v667_v17, 16  ;;  %v669_v26 = vld [vmem:[%s3584_s12 + $0x34] sm:$0x1]  ;;  %v751_v33 = vrot.slane %v749_v24, 5  ;;  %v3457_v12 = vld [vmem:[%s3970_s1 + $0xf8] sm:$0xff]  }
  0x4e   : > { %3081 = vmatmul.mubr.bf16.gmra.mrb[4].mxu1 %v3436_v48  ;;  %v707_v48 = vshll.u32 %v660_v41, 16  ;;  %v730_v9 = vsel %vm3655_vm2, %v725_v5, %v729_v3  ;;  %v737_v29 = vrot.slane %v735_v20, 5  ;;  %v777_v41 = vshll.u32 %v670_v27, 16  ;;  %v3450_v5 = vld [vmem:[%s3970_s1 + $0x1e0] sm:$0xff]   ;;  %v2847_v17 = vld [vmem:[%s3584_s12 + $0x14] sm:$0x1] }
  0x4f   : > { %3089 = vmatpush3.bf16.msra.mxu1 %v3425_v43  ;;  %v683_v42 = vrot.slane %v682_v34, 4  ;;  %v661_v43 = vld [vmem:[%s3584_s12 + $0x14] sm:$0x1]  ;;  %3177 = vmatmul.mubr.bf16.gmra.mrb[4].mxu0 %v2763_v39  ;;  %v757_v34 = vrot.slane %v755_v25, 5  ;;  %v769_v39 = vshll.u32 %v669_v26, 16  ;;  %v1938_v20 = vshrl.u32 %v2846_v16, 16 }
  0x50   : > { %3185 = vmatpush3.bf16.msra.mxu0 %v3426_v52  ;;  %3090 = vmatprep.subr.bf16.mxu1 %v3427_v59  ;;  %v713_v49 = vshll.u32 %v661_v43, 16  ;;  %v706_v52 = vrot.slane %v704_v45, 4  ;;  %v709_v56 = vrot.slane %v707_v48, 5  ;;  %v752_v43 = vor.u32 %v751_v33, %v748_v31  ;;  %v3460_v27 = vld [vmem:[%s3584_s12 + $0xa0] ss:$8 sps:$4 sm:$0xff]  }
  0x51   : > { %3186 = vmatprep.subr.bf16.mxu0 %v3428_v4  ;;  %v688_v51 = vsel %vm3655_vm2, %v683_v42, %v687_v35  ;;  %3196 = vmatprep.mubr.bf16.mxu0 %v3440_v37  ;;  %v760_v35 = vshrl.u32 %v668_v23, 16  ;;  %v3445_v37 = vld [vmem:[%s3970_s1 + $0xd0] sm:$0xff]   ;;  %v765_v45 = vrot.slane %v763_v36, 5  ;;  %v771_v48 = vrot.slane %v769_v39, 5 }
  0x52   : > { %v2644_v61 = vcombine.low %v688_v51, %v702_v55  ;;  %v715_v62 = vrot.slane %v713_v49, 5  ;;  %v710_v0 = vor.u32 %v709_v56, %v706_v52  ;;  %v3446_v42 = vld [vmem:[%s3970_s1 + $0x1d0] sm:$0xff]   ;;  %v776_v49 = vrot.slane %v774_v40, 4 }
  0x53   : > { %3091 = vmatpush3.bf16.msra.mxu1 %v3427_v59  ;;  %v3434_v59 = vld [vmem:[%s3970_s1 + $0xb0] sm:$0xff]   ;;  %v762_v44 = vrot.slane %v760_v35, 4  ;;  %v779_v50 = vrot.slane %v777_v41, 5  ;;  %v753_v51 = vrot.slane %v752_v43, 4  ;;  %v1933_v25 = vshll.u32 %v2845_v15, 16  ;;  %v3464_v35 = vld [vmem:[%s3970_s1 + $0x208] sm:$0xff]  }
  0x54   : > { %3187 = vmatpush3.bf16.msra.mxu0 %v3428_v4  ;;  %3092 = vmatprep.subr.bf16.mxu1 %v3429_v13  ;;  %v711_v2 = vrot.slane %v710_v0, 4  ;;  %v3437_v4 = vld [vmem:[%s3970_s1 + $0xb8] sm:$0xff]   ;;  %v3454_v55 = vld [vmem:[%s3584_s12 + $0x28] ss:$8 sps:$4 sm:$0xff]   ;;  %v1947_v26 = vshll.u32 %v2847_v17, 16 }
  0x55   : > { %3188 = vmatprep.subr.bf16.mxu0 %v3430_v28  ;;  %3100 = vmatprep.mubr.bf16.mxu1 %v2644_v61  ;;  %v766_v52 = vor.u32 %v765_v45, %v762_v44  ;;  %v780_v57 = vor.u32 %v779_v50, %v776_v49  ;;  %v3456_v61 = vld [vmem:[%s3584_s12 + $0x38] ss:$8 sps:$4 sm:$0xff]   ;;  %v3467_v40 = vld [vmem:[%s3970_s1 + $0x210] sm:$0xff]   ;;  %v2852_v49 = vld [vmem:[%s3584_s12 + $0x28] sm:$0xf] }
  0x56   : > { %v716_v8 = vsel %vm3655_vm2, %v711_v2, %v715_v62  ;;  %v3448_v62 = vld [vmem:[%s3970_s1 + $0x1d8] sm:$0xff]   ;;  %v3466_v43 = vld [vmem:[%s3584_s12 + $0xc0] ss:$8 sps:$4 sm:$0xff]  }
  0x57   : > { %3093 = vmatpush3.bf16.msra.mxu1 %v3429_v13  ;;  %v2645_v13 = vcombine.low %v716_v8, %v730_v9  ;;  %v781_v0 = vrot.slane %v780_v57, 4  ;;  %v3451_v8 = vld [vmem:[%s3970_s1 + $0xe8] sm:$0xff]   ;;  %v3465_v31 = vld [vmem:[%s3584_s12 + $0xb0] ss:$8 sps:$4 sm:$0xff]   ;;  %v1980_v57 = vshrl.u32 %v2852_v49, 16 }
  0x58   : > { %3189 = vmatpush3.bf16.msra.mxu0 %v3430_v28  ;;  %3094 = vmatprep.subr.bf16.mxu1 %v3431_v32  ;;  %v734_v28 = vrot.slane %v732_v19, 4  ;;  %v3452_v9 = vld [vmem:[%s3970_s1 + $0x1e8] sm:$0xff]   ;;  %v3471_v33 = vld [vmem:[%s3584_s12 + $0x70] ss:$8 sps:$4 sm:$0xff]  }
  0x59   : > { %3190 = vmatprep.subr.bf16.mxu0 %v3432_v38  ;;  %v3472_v44 = vld [vmem:[%s3584_s12 + $0x80] ss:$8 sps:$4 sm:$0xff]   ;;  %v2848_v45 = vld [vmem:[%s3584_s12 + $0x18] sm:$0xf] }
  0x5a   : > { %v1952_v50 = vshrl.u32 %v2848_v45, 16 }
  0x5b   : > { %3095 = vmatpush3.bf16.msra.mxu1 %v3431_v32  ;;  %v671_v32 = vld [vmem:[%s3584_s12 + $0x3c] sm:$0x1] }
  0x5c   : > { %3191 = vmatpush3.bf16.msra.mxu0 %v3432_v38  ;;  %3096 = vmatprep.subr.bf16.mxu1 %v3434_v59  ;;  %v738_v38 = vor.u32 %v737_v29, %v734_v28  ;;  %v783_v46 = vshll.u32 %v671_v32, 16  ;;  %v1940_v28 = vrot.slane %v1938_v20, 4  ;;  %v1943_v29 = vrot.slane %v1941_v21, 5  ;;  %v3473_v20 = vld [vmem:[%s3970_s1 + $0x230] sm:$0xff]  }
  0x5d   : > { %3192 = vmatprep.subr.bf16.mxu0 %v3435_v60 }
  0x5e   : > { %v739_v47 = vrot.slane %v738_v38, 4  ;;  %v785_v54 = vrot.slane %v783_v46, 5  ;;  %v1949_v38 = vrot.slane %v1947_v26, 5 }
  0x5f   : > { %3097 = vmatpush3.bf16.msra.mxu1 %v3434_v59  ;;  %v758_v59 = vsel %vm3655_vm2, %v753_v51, %v757_v34  ;;  %v1944_v34 = vor.u32 %v1943_v29, %v1940_v28  ;;  %v1955_v51 = vshll.u32 %v2848_v45, 16 }
  0x60   : > { %3193 = vmatpush3.bf16.msra.mxu0 %v3435_v60  ;;  %3098 = vmatprep.subr.bf16.mxu1 %v3437_v4  ;;  %v744_v56 = vsel %vm3655_vm2, %v739_v47, %v743_v30  ;;  %v767_v60 = vrot.slane %v766_v52, 4  ;;  %v786_v3 = vsel %vm3655_vm2, %v781_v0, %v785_v54  ;;  %v3463_v30 = vld [vmem:[%s3584_s12 + $0x60] ss:$8 sps:$4 sm:$0xff]   ;;  %v2854_v52 = vld [vmem:[%s3584_s12 + $0x30] sm:$0xf] }
  0x61   : > { %3194 = vmatprep.subr.bf16.mxu0 %v3438_v6  ;;  %v2646_v63 = vcombine.low %v744_v56, %v758_v59  ;;  %v1945_v39 = vrot.slane %v1944_v34, 4  ;;  %v2850_v47 = vld [vmem:[%s3584_s12 + $0x20] sm:$0xf]  ;;  %v1994_v59 = vshrl.u32 %v2854_v52, 16 }
  0x62   : > { %v772_v2 = vsel %vm3655_vm2, %v767_v60, %v771_v48  ;;  %v3468_v48 = vld [vmem:[%s3970_s1 + $0x218] sm:$0xff]   ;;  %v3469_v54 = vld [vmem:[%s3970_s1 + $0x220] sm:$0xff]   ;;  %v1969_v56 = vshll.u32 %v2850_v47, 16  ;;  %v1997_v60 = vshll.u32 %v2854_v52, 16 }
  0x63   : > { %3099 = vmatpush3.bf16.msra.mxu1 %v3437_v4  ;;  %v3459_v4 = vld [vmem:[%s3584_s12 + $0x90] ss:$8 sps:$4 sm:$0xff]  }
  0x64   : > { %3195 = vmatpush3.bf16.msra.mxu0 %v3438_v6  ;;  %3108 = vmatprep.subr.bf16.mxu1 %v3439_v7  ;;  %v2647_v6 = vcombine.low %v772_v2, %v786_v3  ;;  %v2849_v2 = vld [vmem:[%s3584_s12 + $0x1c] sm:$0x1]  ;;  %v2851_v3 = vld [vmem:[%s3584_s12 + $0x24] sm:$0x1] }
  0x65   : > { %3204 = vmatprep.subr.bf16.mxu0 %v3441_v10  ;;  %v1975_v15 = vshll.u32 %v2851_v3, 16  ;;  %v3483_v3 = vld [vmem:[%s3933_s22] sm:$0xff]  }
  0x66   : > { %3101 = vmatmul.mubr.bf16.vlgmr.msra.gmra.mrb[0].mxu1 %v2645_v13  ;;  %v3458_v13 = vld [vmem:[%s3970_s1 + $0x1f8] sm:$0xff]  }
  0x67   : > { %3109 = vmatpush3.bf16.msra.mxu1 %v3439_v7  ;;  %3197 = vmatmul.mubr.bf16.vlgmr.msra.gmra.mrb[0].mxu0 %v3442_v11  ;;  %v3461_v7 = vld [vmem:[%s3584_s12 + $0x50] ss:$8 sps:$4 sm:$0xff]   ;;  %v1977_v29 = vrot.slane %v1975_v15, 5 }
  0x68   : > { %3205 = vmatpush3.bf16.msra.mxu0 %v3441_v10  ;;  %3110 = vmatprep.subr.bf16.mxu1 %v3443_v14  ;;  %v3453_v10 = vld [vmem:[%s3970_s1 + $0xf0] sm:$0xff]  }
  0x69   : > { %3206 = vmatprep.subr.bf16.mxu0 %v3444_v18  ;;  %3200 = vmatprep.mubr.bf16.mxu0 %v3454_v55  ;;  %v3455_v11 = vld [vmem:[%s3970_s1 + $0x1f0] sm:$0xff]   ;;  %v1966_v55 = vshrl.u32 %v2850_v47, 16 }
  0x6a   : > { %3104 = vmatprep.mubr.bf16.mxu1 %v2646_v63  ;;  %v1957_v63 = vrot.slane %v1955_v51, 5 }
  0x6b   : > { %3111 = vmatpush3.bf16.msra.mxu1 %v3443_v14  ;;  %v2844_v14 = vld [vmem:[%s3584_s12 + $0x8] sm:$0xf]  ;;  %v1968_v0 = vrot.slane %v1966_v55, 4 }
  0x6c   : > { %3207 = vmatpush3.bf16.msra.mxu0 %v3444_v18  ;;  %3112 = vmatprep.subr.bf16.mxu1 %v3445_v37  ;;  %v1924_v18 = vshrl.u32 %v2844_v14, 16  ;;  %v1927_v19 = vshll.u32 %v2844_v14, 16 }
  0x6d   : > { %3208 = vmatprep.subr.bf16.mxu0 %v3446_v42 }
  0x6e   : > { %3105 = vmatmul.mubr.bf16.gmra.mrb[4].mxu1 %v2647_v6  ;;  %v1926_v23 = vrot.slane %v1924_v18, 4  ;;  %v1929_v24 = vrot.slane %v1927_v19, 5 }
  0x6f   : > { %3113 = vmatpush3.bf16.msra.mxu1 %v3445_v37  ;;  %3201 = vmatmul.mubr.bf16.gmra.mrb[4].mxu0 %v3456_v61  ;;  %v1935_v37 = vrot.slane %v1933_v25, 5  ;;  %v3470_v61 = vld [vmem:[%s3970_s1 + $0x228] sm:$0xff]   ;;  %v3474_v25 = vld [vmem:[%s3970_s1 + $0x238] sm:$0xff]  }
  0x70   : > { %3209 = vmatpush3.bf16.msra.mxu0 %v3446_v42  ;;  %3114 = vmatprep.subr.bf16.mxu1 %v3447_v58  ;;  %v1930_v32 = vor.u32 %v1929_v24, %v1926_v23  ;;  %v1950_v42 = vsel %vm3655_vm2, %v1945_v39, %v1949_v38  ;;  %v2859_v39 = vld [vmem:[%s3584_s12 + $0x44] sm:$0x1] }
  0x71   : > { %3210 = vmatprep.subr.bf16.mxu0 %v3448_v62  ;;  %3124 = vmatprep.mubr.bf16.mxu1 %v3459_v4  ;;  %v2856_v4 = vld [vmem:[%s3584_s12 + $0x38] sm:$0xf]  ;;  %v2031_v45 = vshll.u32 %v2859_v39, 16 }
  0x72   : > { %3220 = vmatprep.mubr.bf16.mxu0 %v3461_v7  ;;  %v1931_v36 = vrot.slane %v1930_v32, 4  ;;  %v1996_v7 = vrot.slane %v1994_v59, 4  ;;  %v2008_v16 = vshrl.u32 %v2856_v4, 16  ;;  %v2011_v17 = vshll.u32 %v2856_v4, 16  ;;  %v3476_v59 = vld [vmem:[%s3972_s3 + $0x8] sm:$0xff]  }
  0x73   : > { %3115 = vmatpush3.bf16.msra.mxu1 %v3447_v58  ;;  %v1983_v58 = vshll.u32 %v2852_v49, 16  ;;  %v3484_v4 = vld [vmem:[%s3933_s22 + $0x8] sm:$0xff]  }
  0x74   : > { %3211 = vmatpush3.bf16.msra.mxu0 %v3448_v62  ;;  %3116 = vmatprep.subr.bf16.mxu1 %v3449_v1  ;;  %v1936_v41 = vsel %vm3655_vm2, %v1931_v36, %v1935_v37  ;;  %v1954_v62 = vrot.slane %v1952_v50, 4  ;;  %v2013_v32 = vrot.slane %v2011_v17, 5 }
  0x75   : > { %3212 = vmatprep.subr.bf16.mxu0 %v3450_v5  ;;  %v2876_v46 = vcombine.low %v1936_v41, %v1950_v42  ;;  %v1985_v6 = vrot.slane %v1983_v58, 5  ;;  %v3475_v58 = vld [vmem:[%s3972_s3] sm:$0xff]  }
  0x77   : > { %3117 = vmatpush3.bf16.msra.mxu1 %v3449_v1  ;;  %v1971_v1 = vrot.slane %v1969_v56, 5 }
  0x78   : > { %3213 = vmatpush3.bf16.msra.mxu0 %v3450_v5  ;;  %3118 = vmatprep.subr.bf16.mxu1 %v3451_v8  ;;  %v1982_v5 = vrot.slane %v1980_v57, 4 }
  0x79   : > { %3214 = vmatprep.subr.bf16.mxu0 %v3452_v9  ;;  %v1972_v14 = vor.u32 %v1971_v1, %v1968_v0  ;;  %v3482_v0 = vld [vmem:[%s3972_s3 + $0x38] sm:$0xff]   ;;  %v2360_v1 = vld [vmem:[%s3975_s6] sm:$0x3] }
  0x7a   : > { %v1986_v21 = vor.u32 %v1985_v6, %v1982_v5 }
  0x7b   : > { %3119 = vmatpush3.bf16.msra.mxu1 %v3451_v8  ;;  %v1999_v8 = vrot.slane %v1997_v60, 5  ;;  %v1973_v28 = vrot.slane %v1972_v14, 4  ;;  %v3477_v60 = vld [vmem:[%s3972_s3 + $0x10] sm:$0xff]   ;;  %v2888_v14 = vld [vmem:[%s3971_s2] ss:$0 sm:$0xff] }
  0x7c   : > { %3215 = vmatpush3.bf16.msra.mxu0 %v3452_v9  ;;  %3120 = vmatprep.subr.bf16.mxu1 %v3453_v10  ;;  %v2858_v9 = vld [vmem:[%s3584_s12 + $0x40] sm:$0xf] }
  0x7d   : > { %3216 = vmatprep.subr.bf16.mxu0 %v3455_v11  ;;  %v2022_v18 = vshrl.u32 %v2858_v9, 16  ;;  %v2025_v19 = vshll.u32 %v2858_v9, 16  ;;  %v2000_v23 = vor.u32 %v1999_v8, %v1996_v7  ;;  %v1978_v42 = vsel %vm3655_vm2, %v1973_v28, %v1977_v29 }
  0x7f   : > { %3121 = vmatpush3.bf16.msra.mxu1 %v3453_v10  ;;  %v2853_v10 = vld [vmem:[%s3584_s12 + $0x2c] sm:$0x1]  ;;  %v2027_v34 = vrot.slane %v2025_v19, 5  ;;  %v2001_v37 = vrot.slane %v2000_v23, 4 }
  0x80   : > { %3217 = vmatpush3.bf16.msra.mxu0 %v3455_v11  ;;  %3122 = vmatprep.subr.bf16.mxu1 %v3457_v12  ;;  %v2855_v11 = vld [vmem:[%s3584_s12 + $0x34] sm:$0x1] }
  0x81   : > { %3218 = vmatprep.subr.bf16.mxu0 %v3458_v13  ;;  %v2003_v24 = vshll.u32 %v2855_v11, 16 }
  0x83   : > { %3123 = vmatpush3.bf16.msra.mxu1 %v3457_v12  ;;  %v1958_v12 = vor.u32 %v1957_v63, %v1954_v62  ;;  %v2005_v38 = vrot.slane %v2003_v24, 5  ;;  %v3480_v62 = vld [vmem:[%s3972_s3 + $0x28] sm:$0xff]   ;;  %v3481_v63 = vld [vmem:[%s3972_s3 + $0x30] sm:$0xff]  }
  0x84   : > { %3219 = vmatpush3.bf16.msra.mxu0 %v3458_v13  ;;  %v1961_v13 = vshll.u32 %v2849_v2, 16  ;;  %3252 = vmatprep.subr.bf16.mxu1 %v3475_v58  ;;  %v2396_v2 = vsel %vm2394_vm3, %v2360_v1, 0 }
  0x85   : > { %3228 = vmatprep.subr.bf16.mxu0 %v3462_v22  ;;  %v1959_v26 = vrot.slane %v1958_v12, 4  ;;  %v2006_v47 = vsel %vm3655_vm2, %v2001_v37, %v2005_v38 }
  0x86   : > { %3125 = vmatmul.mubr.bf16.vlgmr.msra.gmra.mrb[0].mxu1 %v3460_v27  ;;  %v1963_v27 = vrot.slane %v1961_v13, 5 }
  0x87   : > { %3221 = vmatmul.mubr.bf16.vlgmr.msra.gmra.mrb[0].mxu0 %v3463_v30  ;;  %3128 = vmatprep.mubr.bf16.mxu1 %v3465_v31  ;;  %v2857_v30 = vld [vmem:[%s3584_s12 + $0x3c] sm:$0x1]  ;;  %v2010_v31 = vrot.slane %v2008_v16, 4 }
  0x88   : > { %3229 = vmatpush3.bf16.msra.mxu0 %v3462_v22  ;;  %3224 = vmatprep.mubr.bf16.mxu0 %v3471_v33  ;;  %v1989_v22 = vshll.u32 %v2853_v10, 16  ;;  %v2024_v33 = vrot.slane %v2022_v18, 4  ;;  %v2017_v41 = vshll.u32 %v2857_v30, 16 }
  0x89   : > { %3230 = vmatprep.subr.bf16.mxu0 %v3464_v35  ;;  %3253 = vmatpush3.bf16.msra.mxu1 %v3475_v58 }
  0x8a   : > { %v1991_v36 = vrot.slane %v1989_v22, 5  ;;  %v2019_v49 = vrot.slane %v2017_v41, 5  ;;  %3254 = vmatprep.subr.bf16.mxu1 %v3476_v59 }
  0x8c   : > { %3231 = vmatpush3.bf16.msra.mxu0 %v3464_v35  ;;  %v1987_v35 = vrot.slane %v1986_v21, 4 }
  0x8d   : > { %3232 = vmatprep.subr.bf16.mxu0 %v3467_v40  ;;  %3255 = vmatpush3.bf16.msra.mxu1 %v3476_v59 }
  0x8e   : > { %3129 = vmatmul.mubr.bf16.gmra.mrb[4].mxu1 %v3466_v43  ;;  %v2014_v43 = vor.u32 %v2013_v32, %v2010_v31  ;;  %3256 = vmatprep.subr.bf16.mxu1 %v3477_v60 }
  0x8f   : > { %3225 = vmatmul.mubr.bf16.gmra.mrb[4].mxu0 %v3472_v44  ;;  %v2028_v44 = vor.u32 %v2027_v34, %v2024_v33 }
  0x90   : > { %3233 = vmatpush3.bf16.msra.mxu0 %v3467_v40  ;;  %3244 = vmatprep.mubr.bf16.mxu0 %v2876_v46  ;;  %v1964_v40 = vsel %vm3655_vm2, %v1959_v26, %v1963_v27  ;;  %v1992_v46 = vsel %vm3655_vm2, %v1987_v35, %v1991_v36  ;;  %v2015_v51 = vrot.slane %v2014_v43, 4 }
  0x91   : > { %3234 = vmatprep.subr.bf16.mxu0 %v3468_v48  ;;  %v2878_v50 = vcombine.low %v1992_v46, %v2006_v47  ;;  %v2029_v52 = vrot.slane %v2028_v44, 4  ;;  %3257 = vmatpush3.bf16.msra.mxu1 %v3477_v60 }
  0x92   : > { %v2020_v55 = vsel %vm3655_vm2, %v2015_v51, %v2019_v49  ;;  %3258 = vmatprep.subr.bf16.mxu1 %v3478_v53  ;;  %v3486_v51 = vld [vmem:[%s3933_s22 + $0x18] sm:$0xff]  }
  0x94   : > { %3235 = vmatpush3.bf16.msra.mxu0 %v3468_v48  ;;  %v2877_v48 = vcombine.low %v1964_v40, %v1978_v42 }
  0x95   : > { %3236 = vmatprep.subr.bf16.mxu0 %v3469_v54  ;;  %3259 = vmatpush3.bf16.msra.mxu1 %v3478_v53 }
  0x98   : > { %3237 = vmatpush3.bf16.msra.mxu0 %v3469_v54  ;;  %v2033_v54 = vrot.slane %v2031_v45, 5 }
  0x99   : > { %3238 = vmatprep.subr.bf16.mxu0 %v3470_v61 }
  0x9a   : > { %v2034_v56 = vsel %vm3655_vm2, %v2029_v52, %v2033_v54 }
  0x9b   : > { %v2879_v57 = vcombine.low %v2020_v55, %v2034_v56 }
  0x9c   : > { %3239 = vmatpush3.bf16.msra.mxu0 %v3470_v61  ;;  %v3479_v61 = vld [vmem:[%s3972_s3 + $0x20] sm:$0xff]  }
  0x9d   : > { %3240 = vmatprep.subr.bf16.mxu0 %v3473_v20  ;;  %3260 = vmatprep.subr.bf16.mxu1 %v3479_v61 }
  0x9e   : > { %3261 = vmatpush3.bf16.msra.mxu1 %v3479_v61 }
  0x9f   : > { %3262 = vmatprep.subr.bf16.mxu1 %v3480_v62 }
  0xa0   : > { %3241 = vmatpush3.bf16.msra.mxu0 %v3473_v20 }
  0xa1   : > { %3242 = vmatprep.subr.bf16.mxu0 %v3474_v25 }
  0xa2   : > { %3263 = vmatpush3.bf16.msra.mxu1 %v3480_v62  ;;  %v2906_v62 = vld [vmem:[%s3976_s7] ss:$0 sm:$0xff] }
  0xa3   : > { %3264 = vmatprep.subr.bf16.mxu1 %v3481_v63 }
  0xa4   : > { %3243 = vmatpush3.bf16.msra.mxu0 %v3474_v25 }
  0xa5   : > { %3368 = vmatprep.subr.msk.bf16.mxu0 %vm2394_vm3, %v2360_v1 }
  0xa6   : > { %3265 = vmatpush3.bf16.msra.mxu1 %v3481_v63 }
  0xa7   : > { %3245 = vmatmul.mubr.bf16.vlgmr.msra.gmra.mrb[0].mxu0 %v2877_v48  ;;  %3266 = vmatprep.subr.bf16.mxu1 %v3482_v0 }
  0xa8   : > { %3248 = vmatprep.mubr.bf16.mxu0 %v2878_v50  ;;  %3277 = vmatpush3.bf16.msra.mxu0 %v2396_v2  ;;  %v3485_v50 = vld [vmem:[%s3933_s22 + $0x10] sm:$0xff]  }
  0xaa   : > { %3267 = vmatpush3.bf16.msra.mxu1 %v3482_v0 }
  0xab   : > { %3369 = vmatprep.subr.msk.bf16.mxu1 %vm2394_vm3, %v2360_v1 }
  0xaf   : > { %3249 = vmatmul.mubr.bf16.gmra.mrb[4].mxu0 %v2879_v57  ;;  %v2889_v57 = vld [vmem:[%s3973_s4] ss:$0 sm:$0xff] }
  0xb0   : > { %3278 = vmatprep.mubr.msk.bf16.mxu0 %vm2381_vm4, %v3483_v3 }
  0xb7   : > { %3279 = vmatmul.mubr.msk.bf16.vlgmr.msra.gmra.mrb[8].mxu0 %vm2381_vm4, %v3484_v4 }
 0x159   : > { %v3126_v5 = vpop.f32.mrb[0].mxu1 }
 0x15a   : > { %v1073_v6 = vpop.f32.mrb[1].mxu1 }
 0x15b   : > { %v3127_v7 = vpop.f32.mrb[2].mxu1 }
 0x15c   : > { %v1076_v8 = vpop.f32.mrb[3].mxu1 }
 0x161   : > { %v3130_v9 = vpop.f32.mrb[4].mxu1 }
 0x162   : > { %v1089_v10 = vpop.f32.mrb[5].mxu1 }
 0x163   : > { %v3131_v11 = vpop.f32.mrb[6].mxu1 }
 0x164   : > { %v1092_v12 = vpop.f32.mrb[7].mxu1 }
 0x17a   : > { %v3246_v13 = vpop.f32.mrb[0].mxu0 }
 0x17b   : > { %v3288_v15 = vadd.f32 %v3246_v13, %v3126_v5  ;;  %v2150_v16 = vpop.f32.mrb[1].mxu0 }
 0x17c   : > { %v3289_v17 = vadd.f32 %v2150_v16, %v1073_v6  ;;  %v3247_v18 = vpop.f32.mrb[2].mxu0 }
 0x17d   : > { %v2198_v19 = vadd.f32 %v3288_v15, %v2888_v14  ;;  %v3290_v20 = vadd.f32 %v3247_v18, %v3127_v7  ;;  %v2153_v21 = vpop.f32.mrb[3].mxu0 }
 0x17e   : > { %v2196_v22 = vadd.f32 %v3289_v17, %v2888_v14  ;;  %v3291_v23 = vadd.f32 %v2153_v21, %v1076_v8 }
 0x17f   : > { %v2199_v24 = vadd.f32 %v3290_v20, %v2888_v14  ;;  %v2206_v26 = vmax.f32 %v2198_v19, 0.0 }
 0x180   : > { %v2197_v25 = vadd.f32 %v3291_v23, %v2888_v14  ;;  %v2204_v28 = vmax.f32 %v2196_v22, 0.0 }
 0x181   : > { %v2207_v27 = vmax.f32 %v2199_v24, 0.0 }
 0x182   : > { %v2205_v29 = vmax.f32 %v2197_v25, 0.0  ;;  %v3250_v30 = vpop.f32.mrb[4].mxu0 }
 0x183   : > { %v2213_v31 = vpack.c.bf16 %v2207_v27, %v2206_v26  ;;  %v3292_v32 = vadd.f32 %v3250_v30, %v3130_v9  ;;  %v2166_v33 = vpop.f32.mrb[5].mxu0 }
 0x184   : > { %v3293_v34 = vadd.f32 %v2166_v33, %v1089_v10  ;;  %v3251_v35 = vpop.f32.mrb[6].mxu0  ;;  %v2212_v36 = vpack.c.bf16 %v2205_v29, %v2204_v28 }
 0x185   : > { %v2202_v37 = vadd.f32 %v3292_v32, %v2888_v14  ;;  %v3294_v38 = vadd.f32 %v3251_v35, %v3131_v11  ;;  %v2169_v39 = vpop.f32.mrb[7].mxu0 }
 0x186   : > { %v2200_v40 = vadd.f32 %v3293_v34, %v2888_v14  ;;  %v3295_v41 = vadd.f32 %v2169_v39, %v1092_v12  ;;  %3268 = vmatprep.mubr.bf16.mxu1 %v2212_v36 }
 0x187   : > { %v2203_v42 = vadd.f32 %v3294_v38, %v2888_v14  ;;  %3269 = vmatmul.mubr.bf16.vlgmr.msra.gmra.mrb[8].mxu1 %v2213_v31  ;;  %v2210_v44 = vmax.f32 %v2202_v37, 0.0 }
 0x188   : > { %v2201_v43 = vadd.f32 %v3295_v41, %v2888_v14  ;;  %3287 = vmatpush3.bf16.msra.mxu1 %v2396_v2  ;;  %v2208_v46 = vmax.f32 %v2200_v40, 0.0 }
 0x189   : > { %v2211_v45 = vmax.f32 %v2203_v42, 0.0 }
 0x18a   : > { %v2209_v47 = vmax.f32 %v2201_v43, 0.0  ;;  %v3280_v52 = vpop.f32.mrb[8].mxu0 }
 0x18b   : > { %v2215_v48 = vpack.c.bf16 %v2211_v45, %v2210_v44  ;;  %v2432_v54 = vpop.f32.mrb[9].mxu0 }
 0x18c   : > { %v2214_v49 = vpack.c.bf16 %v2209_v47, %v2208_v46  ;;  %v3281_v55 = vpop.f32.mrb[10].mxu0 }
 0x18d   : > { %v2435_v56 = vpop.f32.mrb[11].mxu0 }
 0x18e   : > { %3272 = vmatprep.mubr.bf16.mxu1 %v2214_v49 }
 0x18f   : > { %3273 = vmatmul.mubr.bf16.gmra.mrb[12].mxu1 %v2215_v48 }
 0x190   : > { %3282 = vmatprep.mubr.msk.bf16.mxu1 %vm2381_vm4, %v3485_v50 }
 0x19b   : > { %3283 = vmatmul.mubr.msk.bf16.vlgmr.msra.gmra.mrb[12].mxu1 %vm2381_vm4, %v3486_v51 }
 0x25a   : > { %v3270_v58 = vpop.f32.mrb[8].mxu1 }
 0x25b   : > { %v2330_v59 = vadd.f32 %v3270_v58, %v2889_v57  ;;  %v2321_v60 = vpop.f32.mrb[9].mxu1 }
 0x25c   : > { %v2322_v53 = vadd.f32 %v2889_v57, %v2321_v60  ;;  %v3271_v61 = vpop.f32.mrb[10].mxu1 }
 0x25d   : > { %v2333_v63 = vadd.f32 %v3271_v61, %v2889_v57  ;;  %v2465_v0 = vadd.f32 %v3280_v52, %v2330_v59  ;;  %v2324_v1 = vpop.f32.mrb[11].mxu1 }
 0x25e   : > { %v2325_v2 = vadd.f32 %v2889_v57, %v2324_v1  ;;  %v2463_v3 = vadd.f32 %v2432_v54, %v2322_v53 }
 0x25f   : > { %v2480_v4 = vadd.f32 %v2906_v62, %v2465_v0  ;;  %v2466_v5 = vadd.f32 %v3281_v55, %v2333_v63 }
 0x260   : > { %v2478_v6 = vadd.f32 %v2906_v62, %v2463_v3  ;;  %v2464_v7 = vadd.f32 %v2435_v56, %v2325_v2 }
 0x261   : > { %v2488_v8 = vmax.f32 %v2480_v4, 0.0  ;;  %v2481_v9 = vadd.f32 %v2906_v62, %v2466_v5 }
 0x262   : > { %v2486_v10 = vmax.f32 %v2478_v6, 0.0  ;;  %v2479_v11 = vadd.f32 %v2906_v62, %v2464_v7 }
 0x263   : > { %2496 = vst [vmem:[%s3956_s13 + $0x10] sm:$0xff] %v2488_v8  ;;  %v2489_v12 = vmax.f32 %v2481_v9, 0.0 }
 0x264   : > { %2494 = vst [vmem:[%s3956_s13] sm:$0xff] %v2486_v10  ;;  %v2487_v13 = vmax.f32 %v2479_v11, 0.0 }
 0x265   : > { %2497 = vst [vmem:[%s3956_s13 + $0x18] sm:$0xff] %v2489_v12 }
 0x266   : > { %2495 = vst [vmem:[%s3956_s13 + $0x8] sm:$0xff] %v2487_v13 }
 0x26e   : > { %v3284_v14 = vpop.f32.mrb[12].mxu1 }
 0x26f   : > { %v3304_v15 = vadd.f32 %v3284_v14, %v2889_v57  ;;  %v2448_v16 = vpop.f32.mrb[13].mxu1 }
 0x270   : > { %v3305_v17 = vadd.f32 %v2889_v57, %v2448_v16  ;;  %v3285_v18 = vpop.f32.mrb[14].mxu1 }
 0x271   : > { %v2484_v19 = vadd.f32 %v3304_v15, %v2906_v62  ;;  %v3306_v20 = vadd.f32 %v3285_v18, %v2889_v57  ;;  %v2451_v21 = vpop.f32.mrb[15].mxu1 }
 0x272   : > { %v2482_v22 = vadd.f32 %v3305_v17, %v2906_v62  ;;  %v3307_v23 = vadd.f32 %v2889_v57, %v2451_v21 }
 0x273   : > { %v2492_v24 = vmax.f32 %v2484_v19, 0.0  ;;  %v2485_v25 = vadd.f32 %v3306_v20, %v2906_v62 }
 0x274   : > { %v2490_v26 = vmax.f32 %v2482_v22, 0.0  ;;  %v2483_v27 = vadd.f32 %v3307_v23, %v2906_v62 }
 0x275   : > { %2500 = vst [vmem:[%s3956_s13 + $0x30] sm:$0xff] %v2492_v24  ;;  %v2493_v28 = vmax.f32 %v2485_v25, 0.0 }
 0x276   : > { %2498 = vst [vmem:[%s3956_s13 + $0x20] sm:$0xff] %v2490_v26  ;;  %v2491_v29 = vmax.f32 %v2483_v27, 0.0 }
 0x277   : > { %2501 = vst [vmem:[%s3956_s13 + $0x38] sm:$0xff] %v2493_v28 }
 0x278   : > { %2499 = vst [vmem:[%s3956_s13 + $0x28] sm:$0xff] %v2491_v29 }
 0x279 PF: > { %s18_s27 = sadd.s32 1, %s3493_s27  }
 0x27a   : > { %p15_p5 = scmp.ge.s32.totalorder %s18_s27, 4  }
 0x27c   :  { %17 = sbr.rel (!%p15_p5) target bundleno = 1 (0x1), region = 98 }

</bundles_post_ra>
